<compile_context>
chip_gen: v7x
topology: tpu7x:2x2x1
jax: 0.10.0
libtpu: 0.0.40
codegen_flags: <defaults>
</compile_context>

<pallas_src>
import functools

import numpy as np

import jax
import jax.numpy as jnp
from jax.experimental import pallas as pl
from jax.experimental.pallas import tpu as pltpu


# ---------------------------------------------------------------------------
# one-time parameter packing (hoisted out of the forward pass)
# ---------------------------------------------------------------------------
def _banded_slab(w_oihw, W, pad):
    """PyTorch conv weight (Cout, Cin, KH, KW) -> banded slab (W*Cin, KH*W*Cout).

    In the row-major (rows, W*C) layout, y_i = rows @ slab[:, i*W*Cout:(i+1)*W*Cout]
    applies row-tap i of the kernel with the full (kw, Cin) contraction and the
    zero padding along W already folded into the slab's zero blocks.
    """
    w = np.asarray(w_oihw, np.float32)
    Cout, Cin, KH, KW = w.shape
    slab = np.zeros((W * Cin, KH * W * Cout), np.float32)
    for i in range(KH):
        for j in range(KW):
            tap = w[:, :, i, j].T                      # (Cin, Cout)
            for wo in range(W):
                wi = wo - pad + j
                if 0 <= wi < W:
                    r0 = wi * Cin
                    c0 = i * W * Cout + wo * Cout
                    slab[r0:r0 + Cin, c0:c0 + Cout] = tap
    return slab


def prepare_params(params, W, dtype=jnp.float32):
    """(w, b) per conv in PyTorch OIHW layout -> packed fused-kernel operands.

    Use dtype=jnp.bfloat16 on v6e/v7x for ~2-4x MXU throughput.  Biases stay
    f32 (accumulation and the whole epilogue are always f32).
    """
    (w1, b1), (w2, b2), (w3, b3), (w4, b4) = params

    def slab(w, pad):
        return jnp.asarray(_banded_slab(w, W, pad), dtype)

    def bias(b):
        # bias tiled along W so it broadcasts over the (rows, W*Cout) layout.
        return jnp.asarray(np.tile(np.asarray(b, np.float32), W)[None, :])

    return dict(
        a1=slab(w1, 1), b1=bias(b1), kh1=int(w1.shape[2]), pad1=1,
        a2=slab(w2, 0), b2=bias(b2),
        a3=slab(w3, 3), b3=bias(b3), kh3=int(w3.shape[2]), pad3=3,
        a4=slab(w4, 0), b4=bias(b4),
    )


# ---------------------------------------------------------------------------
# fused Pallas kernel
# ---------------------------------------------------------------------------
def _fused_block_kernel(x_ref, a1_ref, b1_ref, a2_ref, b2_ref,
                        a3_ref, b3_ref, a4_ref, b4_ref, out_ref,
                        *, H, kh1, pad1, kh3, pad3):
    f32 = jnp.float32
    M, WCout = out_ref.shape               # M = B*H rows, lane dim = W*Cout

    # Row index within each image (r % H), hoisted once and reused by both
    # spatial convs (JAX does not CSE broadcasts -- don't regenerate per tap).
    row = jax.lax.broadcasted_iota(jnp.int32, (M, WCout), 0) % H

    def banded_conv(lhs, a_ref, b_ref, kh, pad):
        """KHxKW conv in the (M, W*C) layout.

        Per row tap: one full-width MXU matmul against a 128-lane-aligned slab
        slice (kw taps + W zero-padding pre-folded), then an XLU sublane roll +
        VPU masked add implement the zero padding along H exactly -- no shift
        matmuls, no in-kernel pads.  Per-tap accumulation keeps live data at
        ~2x(M, WCout) instead of (M, KH*WCout).
        """
        lhs = lhs.astype(a_ref.dtype)       # bf16 slabs -> bf16 MXU operands

        def tap(i):
            return jnp.dot(lhs, a_ref[:, pl.ds(i * WCout, WCout)],
                           preferred_element_type=f32)

        acc = tap(pad)                      # centre tap: no roll, no mask
        for i in range(kh):
            if i == pad:
                continue
            d = i - pad                     # source row = output row + d
            y = pltpu.roll(tap(i), shift=(-d) % M, axis=0)   # sublane roll
            ok = ((row + d) >= 0) & ((row + d) < H)          # exact H zero-pad
            acc = acc + jnp.where(ok, y, 0.0)
        return acc + b_ref[...]             # f32 accumulate + f32 bias

    def conv1x1(lhs, a_ref, b_ref):
        return jnp.dot(lhs.astype(a_ref.dtype), a_ref[...],
                       preferred_element_type=f32) + b_ref[...]

    x = x_ref[...]                          # (M, W*Cin)

    # conv3x3 (pad 1) + ReLU  -> residual
    x_res = jnp.maximum(banded_conv(x, a1_ref, b1_ref, kh1, pad1), 0.0)
    # conv1x1 + ReLU
    h = jnp.maximum(conv1x1(x_res, a2_ref, b2_ref), 0.0)
    # conv7x7 (pad 3) + ReLU
    h = jnp.maximum(banded_conv(h, a3_ref, b3_ref, kh3, pad3), 0.0)
    # conv1x1 + residual + ReLU
    out = conv1x1(h, a4_ref, b4_ref) + x_res
    out_ref[...] = jnp.maximum(out, 0.0).astype(out_ref.dtype)


# ---------------------------------------------------------------------------
# wrappers
# ---------------------------------------------------------------------------
def _pick_block_batch(N, H, target_rows=256):
    """Largest divisor B of N with B*H <= target_rows (fills the MXU M dim).
    On v7x you may prefer a smaller B that leaves >=2 grid steps so both
    TensorCores get work; on v5e/v6e (1 TC) bigger is better."""
    best = 1
    for b in range(1, N + 1):
        if N % b == 0 and b * H <= target_rows:
            best = b
    return best


def ms_resnet_block_rows(x_rows, prep, *, block_batch=None):
    """Fused forward on row-major activations: (N, H, W*Cin) -> (N, H, W*Cout)."""
    N, H, WCin = x_rows.shape
    WCout = prep["b4"].shape[1]
    B = block_batch if block_batch is not None else _pick_block_batch(N, H)
    assert N % B == 0, (N, B)
    BH = B * H

    x2 = x_rows.reshape(N * H, WCin)

    kernel = functools.partial(
        _fused_block_kernel, H=H,
        kh1=prep["kh1"], pad1=prep["pad1"],
        kh3=prep["kh3"], pad3=prep["pad3"])

    def const(a):                            # constant-index: DMA'd once
        return pl.BlockSpec(a.shape, lambda n: (0, 0))

    out2 = pl.pallas_call(
        kernel,
        out_shape=jax.ShapeDtypeStruct((N * H, WCout), x_rows.dtype),
        grid=(N // B,),
        in_specs=[
            pl.BlockSpec((BH, WCin), lambda n: (n, 0)),
            const(prep["a1"]), const(prep["b1"]),
            const(prep["a2"]), const(prep["b2"]),
            const(prep["a3"]), const(prep["b3"]),
            const(prep["a4"]), const(prep["b4"]),
        ],
        out_specs=pl.BlockSpec((BH, WCout), lambda n: (n, 0)),
        compiler_params=pltpu.CompilerParams(
            dimension_semantics=("parallel",)),
    )(x2, prep["a1"], prep["b1"], prep["a2"], prep["b2"],
      prep["a3"], prep["b3"], prep["a4"], prep["b4"])

    return out2.reshape(N, H, WCout)


def ms_resnet_block_nchw(x_nchw, prep, **kw):
    """NCHW adapter matching the PyTorch module interface.  In a real network
    keep activations in the (N, H, W*C) row layout end-to-end and drop these
    transposes (each is a full HBM round trip of the activation)."""
    N, Cin, H, W = x_nchw.shape
    WCout = prep["b4"].shape[1]
    Cout = WCout // W
    x_rows = jnp.transpose(x_nchw, (0, 2, 3, 1)).reshape(N, H, W * Cin)
    out = ms_resnet_block_rows(x_rows, prep, **kw)
    return jnp.transpose(out.reshape(N, H, W, Cout), (0, 3, 1, 2))


# ---------------------- reference (plain JAX / XLA convs) ----------------------
def _conv_ref(x, w, b, pad):
    y = jax.lax.conv_general_dilated(
        x, w, window_strides=(1, 1), padding=[(pad, pad), (pad, pad)],
        dimension_numbers=("NCHW", "OIHW", "NCHW"))
    return y + b[None, :, None, None]


def ms_resnet_block_ref(x, params):
    (w1, b1), (w2, b2), (w3, b3), (w4, b4) = params
    x_ = jax.nn.relu(_conv_ref(x, w1, b1, 1))
    h = jax.nn.relu(_conv_ref(x_, w2, b2, 0))
    h = jax.nn.relu(_conv_ref(h, w3, b3, 3))
    return jax.nn.relu(_conv_ref(h, w4, b4, 0) + x_)


# ---------------------- param init (deterministic) ----------------------
def _init_conv(key, cout, cin, k):
    kw_key, kb_key = jax.random.split(key)
    fan_in = cin * k * k
    bound = 1.0 / jnp.sqrt(fan_in)
    w = jax.random.uniform(kw_key, (cout, cin, k, k), jnp.float32, -bound, bound)
    b = jax.random.uniform(kb_key, (cout,), jnp.float32, -bound, bound)
    return w, b


if __name__ == "__main__":
    in_channels, out_channels = 4, 8
    N, H, W = 2, 16, 16                      # W*Cout = 128 -> lane-dense output

    root = jax.random.PRNGKey(0)
    kx, k1, k2, k3, k4 = jax.random.split(root, 5)

    params = (
        _init_conv(k1, out_channels, in_channels, 3),   # self.conv (3x3, pad 1)
        _init_conv(k2, out_channels, out_channels, 1),  # block conv1x1
        _init_conv(k3, out_channels, out_channels, 7),  # block conv7x7, pad 3
        _init_conv(k4, out_channels, out_channels, 1),  # block conv1x1
    )

    x = jax.random.normal(kx, (N, in_channels, H, W), jnp.float32)
    ref = ms_resnet_block_ref(x, params)

    # --- f32 MXU path (exact check vs XLA conv reference) ---
    prep_f32 = prepare_params(params, W, dtype=jnp.float32)
    out = jax.block_until_ready(ms_resnet_block_nchw(x, prep_f32))
    assert out.shape == ref.shape == (N, out_channels, H, W)
    assert jnp.allclose(out, ref, rtol=1e-4, atol=1e-4), (
        float(jnp.max(jnp.abs(out - ref))))

    # --- bf16 MXU path (v6e/v7x throughput mode), f32 accumulate/epilogue ---
    prep_bf16 = prepare_params(params, W, dtype=jnp.bfloat16)
    out_bf16 = jax.block_until_ready(ms_resnet_block_nchw(x, prep_bf16))
    assert jnp.allclose(out_bf16, ref, rtol=1e-1, atol=1e-1), (
        float(jnp.max(jnp.abs(out_bf16 - ref))))

    print("KERNEL_OK")
</pallas_src>

<mosaic_0001>
module attributes {stable_mosaic.version = 11 : i64} {
  func.func @_fused_block_kernel(%arg0: i32, %arg1: memref<32x64xf32, #tpu.memory_space<vmem>>, %arg2: memref<64x384xf32, #tpu.memory_space<vmem>>, %arg3: memref<1x128xf32, #tpu.memory_space<vmem>>, %arg4: memref<128x128xf32, #tpu.memory_space<vmem>>, %arg5: memref<1x128xf32, #tpu.memory_space<vmem>>, %arg6: memref<128x896xf32, #tpu.memory_space<vmem>>, %arg7: memref<1x128xf32, #tpu.memory_space<vmem>>, %arg8: memref<128x128xf32, #tpu.memory_space<vmem>>, %arg9: memref<1x128xf32, #tpu.memory_space<vmem>>, %arg10: memref<32x128xf32, #tpu.memory_space<vmem>>) attributes {dimension_semantics = [#tpu.dimension_semantics<parallel>], iteration_bounds = array<i64: 1>, scalar_prefetch = 0 : i64, scratch_operands = 0 : i64, tpu.core_type = #tpu.core_type<tc>, window_params = [{transform_indices = @transform_0, window_bounds = array<i64: 32, 64>}, {pipeline_mode = #tpu.pipeline_mode<synchronous>, transform_indices = @transform_1, window_bounds = array<i64: 64, 384>}, {pipeline_mode = #tpu.pipeline_mode<synchronous>, transform_indices = @transform_2, window_bounds = array<i64: 1, 128>}, {pipeline_mode = #tpu.pipeline_mode<synchronous>, transform_indices = @transform_3, window_bounds = array<i64: 128, 128>}, {pipeline_mode = #tpu.pipeline_mode<synchronous>, transform_indices = @transform_4, window_bounds = array<i64: 1, 128>}, {pipeline_mode = #tpu.pipeline_mode<synchronous>, transform_indices = @transform_5, window_bounds = array<i64: 128, 896>}, {pipeline_mode = #tpu.pipeline_mode<synchronous>, transform_indices = @transform_6, window_bounds = array<i64: 1, 128>}, {pipeline_mode = #tpu.pipeline_mode<synchronous>, transform_indices = @transform_7, window_bounds = array<i64: 128, 128>}, {pipeline_mode = #tpu.pipeline_mode<synchronous>, transform_indices = @transform_8, window_bounds = array<i64: 1, 128>}, {transform_indices = @transform_9, window_bounds = array<i64: 32, 128>}]} {
    %0 = tpu.iota {dimensions = array<i32: 0>} : vector<32x128xi32>
    %c16_i32 = arith.constant 16 : i32
    %c0_i32 = arith.constant 0 : i32
    %1 = arith.cmpi eq, %c16_i32, %c0_i32 : i32
    %c1_i32 = arith.constant 1 : i32
    %2 = arith.select %1, %c1_i32, %c16_i32 : i32
    %3 = vector.broadcast %2 : i32 to vector<32x128xi32>
    %4 = arith.remsi %0, %3 : vector<32x128xi32>
    %c0_i32_0 = arith.constant 0 : i32
    %5 = vector.broadcast %c0_i32_0 : i32 to vector<32x128xi32>
    %6 = arith.cmpi ne, %4, %5 : vector<32x128xi32>
    %c0_i32_1 = arith.constant 0 : i32
    %7 = vector.broadcast %c0_i32_1 : i32 to vector<32x128xi32>
    %8 = arith.cmpi slt, %4, %7 : vector<32x128xi32>
    %c0_i32_2 = arith.constant 0 : i32
    %9 = arith.cmpi slt, %2, %c0_i32_2 : i32
    %10 = vector.broadcast %9 : i1 to vector<32x128xi1>
    %11 = vector.broadcast %10 : vector<32x128xi1> to vector<32x128xi1>
    %12 = arith.xori %8, %11 : vector<32x128xi1>
    %13 = arith.andi %12, %6 : vector<32x128xi1>
    %14 = vector.broadcast %2 : i32 to vector<32x128xi32>
    %15 = arith.addi %4, %14 : vector<32x128xi32>
    %16 = arith.select %13, %15, %4 : vector<32x128xi1>, vector<32x128xi32>
    %c0 = arith.constant 0 : index
    %c0_3 = arith.constant 0 : index
    %17 = vector.load %arg1[%c0, %c0_3] : memref<32x64xf32, #tpu.memory_space<vmem>>, vector<32x64xf32>
    %c0_4 = arith.constant 0 : index
    %c128 = arith.constant 128 : index
    %18 = vector.load %arg2[%c0_4, %c128] : memref<64x384xf32, #tpu.memory_space<vmem>>, vector<64x128xf32>
    %cst = arith.constant dense<0.000000e+00> : vector<32x128xf32>
    %19 = tpu.matmul %17, %18, %cst {dimension_numbers = #tpu.dot_dimension_numbers<[1], [0], [0], [1], [0, 0, 1, 1], [], []>} : vector<32x64xf32>, vector<64x128xf32>, vector<32x128xf32> -> vector<32x128xf32>
    %c0_5 = arith.constant 0 : index
    %c0_6 = arith.constant 0 : index
    %20 = vector.load %arg2[%c0_5, %c0_6] : memref<64x384xf32, #tpu.memory_space<vmem>>, vector<64x128xf32>
    %cst_7 = arith.constant dense<0.000000e+00> : vector<32x128xf32>
    %21 = tpu.matmul %17, %20, %cst_7 {dimension_numbers = #tpu.dot_dimension_numbers<[1], [0], [0], [1], [0, 0, 1, 1], [], []>} : vector<32x64xf32>, vector<64x128xf32>, vector<32x128xf32> -> vector<32x128xf32>
    %c1_i32_8 = arith.constant 1 : i32
    %22 = tpu.dynamic_rotate %21 by %c1_i32_8 dim 0 : vector<32x128xf32>, i32 -> vector<32x128xf32>
    %c-1_i32 = arith.constant -1 : i32
    %23 = vector.broadcast %c-1_i32 : i32 to vector<32x128xi32>
    %24 = arith.addi %16, %23 : vector<32x128xi32>
    %c0_i32_9 = arith.constant 0 : i32
    %25 = vector.broadcast %c0_i32_9 : i32 to vector<32x128xi32>
    %26 = arith.cmpi sge, %24, %25 : vector<32x128xi32>
    %c-1_i32_10 = arith.constant -1 : i32
    %27 = vector.broadcast %c-1_i32_10 : i32 to vector<32x128xi32>
    %28 = arith.addi %16, %27 : vector<32x128xi32>
    %c16_i32_11 = arith.constant 16 : i32
    %29 = vector.broadcast %c16_i32_11 : i32 to vector<32x128xi32>
    %30 = arith.cmpi slt, %28, %29 : vector<32x128xi32>
    %31 = arith.andi %26, %30 : vector<32x128xi1>
    %cst_12 = arith.constant 0.000000e+00 : f32
    %32 = vector.broadcast %cst_12 : f32 to vector<32x128xf32>
    %33 = arith.select %31, %22, %32 : vector<32x128xi1>, vector<32x128xf32>
    %34 = arith.addf %19, %33 : vector<32x128xf32>
    %c0_13 = arith.constant 0 : index
    %c256 = arith.constant 256 : index
    %35 = vector.load %arg2[%c0_13, %c256] : memref<64x384xf32, #tpu.memory_space<vmem>>, vector<64x128xf32>
    %cst_14 = arith.constant dense<0.000000e+00> : vector<32x128xf32>
    %36 = tpu.matmul %17, %35, %cst_14 {dimension_numbers = #tpu.dot_dimension_numbers<[1], [0], [0], [1], [0, 0, 1, 1], [], []>} : vector<32x64xf32>, vector<64x128xf32>, vector<32x128xf32> -> vector<32x128xf32>
    %c31_i32 = arith.constant 31 : i32
    %37 = tpu.dynamic_rotate %36 by %c31_i32 dim 0 : vector<32x128xf32>, i32 -> vector<32x128xf32>
    %c1_i32_15 = arith.constant 1 : i32
    %38 = vector.broadcast %c1_i32_15 : i32 to vector<32x128xi32>
    %39 = arith.addi %16, %38 : vector<32x128xi32>
    %c0_i32_16 = arith.constant 0 : i32
    %40 = vector.broadcast %c0_i32_16 : i32 to vector<32x128xi32>
    %41 = arith.cmpi sge, %39, %40 : vector<32x128xi32>
    %c1_i32_17 = arith.constant 1 : i32
    %42 = vector.broadcast %c1_i32_17 : i32 to vector<32x128xi32>
    %43 = arith.addi %16, %42 : vector<32x128xi32>
    %c16_i32_18 = arith.constant 16 : i32
    %44 = vector.broadcast %c16_i32_18 : i32 to vector<32x128xi32>
    %45 = arith.cmpi slt, %43, %44 : vector<32x128xi32>
    %46 = arith.andi %41, %45 : vector<32x128xi1>
    %cst_19 = arith.constant 0.000000e+00 : f32
    %47 = vector.broadcast %cst_19 : f32 to vector<32x128xf32>
    %48 = arith.select %46, %37, %47 : vector<32x128xi1>, vector<32x128xf32>
    %49 = arith.addf %34, %48 : vector<32x128xf32>
    %c0_20 = arith.constant 0 : index
    %c0_21 = arith.constant 0 : index
    %50 = vector.load %arg3[%c0_20, %c0_21] : memref<1x128xf32, #tpu.memory_space<vmem>>, vector<1x128xf32>
    %51 = vector.broadcast %50 : vector<1x128xf32> to vector<32x128xf32>
    %52 = arith.addf %49, %51 : vector<32x128xf32>
    %cst_22 = arith.constant 0.000000e+00 : f32
    %53 = vector.broadcast %cst_22 : f32 to vector<32x128xf32>
    %54 = arith.maximumf %52, %53 : vector<32x128xf32>
    %c0_23 = arith.constant 0 : index
    %c0_24 = arith.constant 0 : index
    %55 = vector.load %arg4[%c0_23, %c0_24] : memref<128x128xf32, #tpu.memory_space<vmem>>, vector<128x128xf32>
    %cst_25 = arith.constant dense<0.000000e+00> : vector<32x128xf32>
    %56 = tpu.matmul %54, %55, %cst_25 {dimension_numbers = #tpu.dot_dimension_numbers<[1], [0], [0], [1], [0, 0, 1, 1], [], []>} : vector<32x128xf32>, vector<128x128xf32>, vector<32x128xf32> -> vector<32x128xf32>
    %c0_26 = arith.constant 0 : index
    %c0_27 = arith.constant 0 : index
    %57 = vector.load %arg5[%c0_26, %c0_27] : memref<1x128xf32, #tpu.memory_space<vmem>>, vector<1x128xf32>
    %58 = vector.broadcast %57 : vector<1x128xf32> to vector<32x128xf32>
    %59 = arith.addf %56, %58 : vector<32x128xf32>
    %cst_28 = arith.constant 0.000000e+00 : f32
    %60 = vector.broadcast %cst_28 : f32 to vector<32x128xf32>
    %61 = arith.maximumf %59, %60 : vector<32x128xf32>
    %c0_29 = arith.constant 0 : index
    %c384 = arith.constant 384 : index
    %62 = vector.load %arg6[%c0_29, %c384] : memref<128x896xf32, #tpu.memory_space<vmem>>, vector<128x128xf32>
    %cst_30 = arith.constant dense<0.000000e+00> : vector<32x128xf32>
    %63 = tpu.matmul %61, %62, %cst_30 {dimension_numbers = #tpu.dot_dimension_numbers<[1], [0], [0], [1], [0, 0, 1, 1], [], []>} : vector<32x128xf32>, vector<128x128xf32>, vector<32x128xf32> -> vector<32x128xf32>
    %c0_31 = arith.constant 0 : index
    %c0_32 = arith.constant 0 : index
    %64 = vector.load %arg6[%c0_31, %c0_32] : memref<128x896xf32, #tpu.memory_space<vmem>>, vector<128x128xf32>
    %cst_33 = arith.constant dense<0.000000e+00> : vector<32x128xf32>
    %65 = tpu.matmul %61, %64, %cst_33 {dimension_numbers = #tpu.dot_dimension_numbers<[1], [0], [0], [1], [0, 0, 1, 1], [], []>} : vector<32x128xf32>, vector<128x128xf32>, vector<32x128xf32> -> vector<32x128xf32>
    %c3_i32 = arith.constant 3 : i32
    %66 = tpu.dynamic_rotate %65 by %c3_i32 dim 0 : vector<32x128xf32>, i32 -> vector<32x128xf32>
    %c-3_i32 = arith.constant -3 : i32
    %67 = vector.broadcast %c-3_i32 : i32 to vector<32x128xi32>
    %68 = arith.addi %16, %67 : vector<32x128xi32>
    %c0_i32_34 = arith.constant 0 : i32
    %69 = vector.broadcast %c0_i32_34 : i32 to vector<32x128xi32>
    %70 = arith.cmpi sge, %68, %69 : vector<32x128xi32>
    %c-3_i32_35 = arith.constant -3 : i32
    %71 = vector.broadcast %c-3_i32_35 : i32 to vector<32x128xi32>
    %72 = arith.addi %16, %71 : vector<32x128xi32>
    %c16_i32_36 = arith.constant 16 : i32
    %73 = vector.broadcast %c16_i32_36 : i32 to vector<32x128xi32>
    %74 = arith.cmpi slt, %72, %73 : vector<32x128xi32>
    %75 = arith.andi %70, %74 : vector<32x128xi1>
    %cst_37 = arith.constant 0.000000e+00 : f32
    %76 = vector.broadcast %cst_37 : f32 to vector<32x128xf32>
    %77 = arith.select %75, %66, %76 : vector<32x128xi1>, vector<32x128xf32>
    %78 = arith.addf %63, %77 : vector<32x128xf32>
    %c0_38 = arith.constant 0 : index
    %c128_39 = arith.constant 128 : index
    %79 = vector.load %arg6[%c0_38, %c128_39] : memref<128x896xf32, #tpu.memory_space<vmem>>, vector<128x128xf32>
    %cst_40 = arith.constant dense<0.000000e+00> : vector<32x128xf32>
    %80 = tpu.matmul %61, %79, %cst_40 {dimension_numbers = #tpu.dot_dimension_numbers<[1], [0], [0], [1], [0, 0, 1, 1], [], []>} : vector<32x128xf32>, vector<128x128xf32>, vector<32x128xf32> -> vector<32x128xf32>
    %c2_i32 = arith.constant 2 : i32
    %81 = tpu.dynamic_rotate %80 by %c2_i32 dim 0 : vector<32x128xf32>, i32 -> vector<32x128xf32>
    %c-2_i32 = arith.constant -2 : i32
    %82 = vector.broadcast %c-2_i32 : i32 to vector<32x128xi32>
    %83 = arith.addi %16, %82 : vector<32x128xi32>
    %c0_i32_41 = arith.constant 0 : i32
    %84 = vector.broadcast %c0_i32_41 : i32 to vector<32x128xi32>
    %85 = arith.cmpi sge, %83, %84 : vector<32x128xi32>
    %c-2_i32_42 = arith.constant -2 : i32
    %86 = vector.broadcast %c-2_i32_42 : i32 to vector<32x128xi32>
    %87 = arith.addi %16, %86 : vector<32x128xi32>
    %c16_i32_43 = arith.constant 16 : i32
    %88 = vector.broadcast %c16_i32_43 : i32 to vector<32x128xi32>
    %89 = arith.cmpi slt, %87, %88 : vector<32x128xi32>
    %90 = arith.andi %85, %89 : vector<32x128xi1>
    %cst_44 = arith.constant 0.000000e+00 : f32
    %91 = vector.broadcast %cst_44 : f32 to vector<32x128xf32>
    %92 = arith.select %90, %81, %91 : vector<32x128xi1>, vector<32x128xf32>
    %93 = arith.addf %78, %92 : vector<32x128xf32>
    %c0_45 = arith.constant 0 : index
    %c256_46 = arith.constant 256 : index
    %94 = vector.load %arg6[%c0_45, %c256_46] : memref<128x896xf32, #tpu.memory_space<vmem>>, vector<128x128xf32>
    %cst_47 = arith.constant dense<0.000000e+00> : vector<32x128xf32>
    %95 = tpu.matmul %61, %94, %cst_47 {dimension_numbers = #tpu.dot_dimension_numbers<[1], [0], [0], [1], [0, 0, 1, 1], [], []>} : vector<32x128xf32>, vector<128x128xf32>, vector<32x128xf32> -> vector<32x128xf32>
    %c1_i32_48 = arith.constant 1 : i32
    %96 = tpu.dynamic_rotate %95 by %c1_i32_48 dim 0 : vector<32x128xf32>, i32 -> vector<32x128xf32>
    %c-1_i32_49 = arith.constant -1 : i32
    %97 = vector.broadcast %c-1_i32_49 : i32 to vector<32x128xi32>
    %98 = arith.addi %16, %97 : vector<32x128xi32>
    %c0_i32_50 = arith.constant 0 : i32
    %99 = vector.broadcast %c0_i32_50 : i32 to vector<32x128xi32>
    %100 = arith.cmpi sge, %98, %99 : vector<32x128xi32>
    %c-1_i32_51 = arith.constant -1 : i32
    %101 = vector.broadcast %c-1_i32_51 : i32 to vector<32x128xi32>
    %102 = arith.addi %16, %101 : vector<32x128xi32>
    %c16_i32_52 = arith.constant 16 : i32
    %103 = vector.broadcast %c16_i32_52 : i32 to vector<32x128xi32>
    %104 = arith.cmpi slt, %102, %103 : vector<32x128xi32>
    %105 = arith.andi %100, %104 : vector<32x128xi1>
    %cst_53 = arith.constant 0.000000e+00 : f32
    %106 = vector.broadcast %cst_53 : f32 to vector<32x128xf32>
    %107 = arith.select %105, %96, %106 : vector<32x128xi1>, vector<32x128xf32>
    %108 = arith.addf %93, %107 : vector<32x128xf32>
    %c0_54 = arith.constant 0 : index
    %c512 = arith.constant 512 : index
    %109 = vector.load %arg6[%c0_54, %c512] : memref<128x896xf32, #tpu.memory_space<vmem>>, vector<128x128xf32>
    %cst_55 = arith.constant dense<0.000000e+00> : vector<32x128xf32>
    %110 = tpu.matmul %61, %109, %cst_55 {dimension_numbers = #tpu.dot_dimension_numbers<[1], [0], [0], [1], [0, 0, 1, 1], [], []>} : vector<32x128xf32>, vector<128x128xf32>, vector<32x128xf32> -> vector<32x128xf32>
    %c31_i32_56 = arith.constant 31 : i32
    %111 = tpu.dynamic_rotate %110 by %c31_i32_56 dim 0 : vector<32x128xf32>, i32 -> vector<32x128xf32>
    %c1_i32_57 = arith.constant 1 : i32
    %112 = vector.broadcast %c1_i32_57 : i32 to vector<32x128xi32>
    %113 = arith.addi %16, %112 : vector<32x128xi32>
    %c0_i32_58 = arith.constant 0 : i32
    %114 = vector.broadcast %c0_i32_58 : i32 to vector<32x128xi32>
    %115 = arith.cmpi sge, %113, %114 : vector<32x128xi32>
    %c1_i32_59 = arith.constant 1 : i32
    %116 = vector.broadcast %c1_i32_59 : i32 to vector<32x128xi32>
    %117 = arith.addi %16, %116 : vector<32x128xi32>
    %c16_i32_60 = arith.constant 16 : i32
    %118 = vector.broadcast %c16_i32_60 : i32 to vector<32x128xi32>
    %119 = arith.cmpi slt, %117, %118 : vector<32x128xi32>
    %120 = arith.andi %115, %119 : vector<32x128xi1>
    %cst_61 = arith.constant 0.000000e+00 : f32
    %121 = vector.broadcast %cst_61 : f32 to vector<32x128xf32>
    %122 = arith.select %120, %111, %121 : vector<32x128xi1>, vector<32x128xf32>
    %123 = arith.addf %108, %122 : vector<32x128xf32>
    %c0_62 = arith.constant 0 : index
    %c640 = arith.constant 640 : index
    %124 = vector.load %arg6[%c0_62, %c640] : memref<128x896xf32, #tpu.memory_space<vmem>>, vector<128x128xf32>
    %cst_63 = arith.constant dense<0.000000e+00> : vector<32x128xf32>
    %125 = tpu.matmul %61, %124, %cst_63 {dimension_numbers = #tpu.dot_dimension_numbers<[1], [0], [0], [1], [0, 0, 1, 1], [], []>} : vector<32x128xf32>, vector<128x128xf32>, vector<32x128xf32> -> vector<32x128xf32>
    %c30_i32 = arith.constant 30 : i32
    %126 = tpu.dynamic_rotate %125 by %c30_i32 dim 0 : vector<32x128xf32>, i32 -> vector<32x128xf32>
    %c2_i32_64 = arith.constant 2 : i32
    %127 = vector.broadcast %c2_i32_64 : i32 to vector<32x128xi32>
    %128 = arith.addi %16, %127 : vector<32x128xi32>
    %c0_i32_65 = arith.constant 0 : i32
    %129 = vector.broadcast %c0_i32_65 : i32 to vector<32x128xi32>
    %130 = arith.cmpi sge, %128, %129 : vector<32x128xi32>
    %c2_i32_66 = arith.constant 2 : i32
    %131 = vector.broadcast %c2_i32_66 : i32 to vector<32x128xi32>
    %132 = arith.addi %16, %131 : vector<32x128xi32>
    %c16_i32_67 = arith.constant 16 : i32
    %133 = vector.broadcast %c16_i32_67 : i32 to vector<32x128xi32>
    %134 = arith.cmpi slt, %132, %133 : vector<32x128xi32>
    %135 = arith.andi %130, %134 : vector<32x128xi1>
    %cst_68 = arith.constant 0.000000e+00 : f32
    %136 = vector.broadcast %cst_68 : f32 to vector<32x128xf32>
    %137 = arith.select %135, %126, %136 : vector<32x128xi1>, vector<32x128xf32>
    %138 = arith.addf %123, %137 : vector<32x128xf32>
    %c0_69 = arith.constant 0 : index
    %c768 = arith.constant 768 : index
    %139 = vector.load %arg6[%c0_69, %c768] : memref<128x896xf32, #tpu.memory_space<vmem>>, vector<128x128xf32>
    %cst_70 = arith.constant dense<0.000000e+00> : vector<32x128xf32>
    %140 = tpu.matmul %61, %139, %cst_70 {dimension_numbers = #tpu.dot_dimension_numbers<[1], [0], [0], [1], [0, 0, 1, 1], [], []>} : vector<32x128xf32>, vector<128x128xf32>, vector<32x128xf32> -> vector<32x128xf32>
    %c29_i32 = arith.constant 29 : i32
    %141 = tpu.dynamic_rotate %140 by %c29_i32 dim 0 : vector<32x128xf32>, i32 -> vector<32x128xf32>
    %c3_i32_71 = arith.constant 3 : i32
    %142 = vector.broadcast %c3_i32_71 : i32 to vector<32x128xi32>
    %143 = arith.addi %16, %142 : vector<32x128xi32>
    %c0_i32_72 = arith.constant 0 : i32
    %144 = vector.broadcast %c0_i32_72 : i32 to vector<32x128xi32>
    %145 = arith.cmpi sge, %143, %144 : vector<32x128xi32>
    %c3_i32_73 = arith.constant 3 : i32
    %146 = vector.broadcast %c3_i32_73 : i32 to vector<32x128xi32>
    %147 = arith.addi %16, %146 : vector<32x128xi32>
    %c16_i32_74 = arith.constant 16 : i32
    %148 = vector.broadcast %c16_i32_74 : i32 to vector<32x128xi32>
    %149 = arith.cmpi slt, %147, %148 : vector<32x128xi32>
    %150 = arith.andi %145, %149 : vector<32x128xi1>
    %cst_75 = arith.constant 0.000000e+00 : f32
    %151 = vector.broadcast %cst_75 : f32 to vector<32x128xf32>
    %152 = arith.select %150, %141, %151 : vector<32x128xi1>, vector<32x128xf32>
    %153 = arith.addf %138, %152 : vector<32x128xf32>
    %c0_76 = arith.constant 0 : index
    %c0_77 = arith.constant 0 : index
    %154 = vector.load %arg7[%c0_76, %c0_77] : memref<1x128xf32, #tpu.memory_space<vmem>>, vector<1x128xf32>
    %155 = vector.broadcast %154 : vector<1x128xf32> to vector<32x128xf32>
    %156 = arith.addf %153, %155 : vector<32x128xf32>
    %cst_78 = arith.constant 0.000000e+00 : f32
    %157 = vector.broadcast %cst_78 : f32 to vector<32x128xf32>
    %158 = arith.maximumf %156, %157 : vector<32x128xf32>
    %c0_79 = arith.constant 0 : index
    %c0_80 = arith.constant 0 : index
    %159 = vector.load %arg8[%c0_79, %c0_80] : memref<128x128xf32, #tpu.memory_space<vmem>>, vector<128x128xf32>
    %cst_81 = arith.constant dense<0.000000e+00> : vector<32x128xf32>
    %160 = tpu.matmul %158, %159, %cst_81 {dimension_numbers = #tpu.dot_dimension_numbers<[1], [0], [0], [1], [0, 0, 1, 1], [], []>} : vector<32x128xf32>, vector<128x128xf32>, vector<32x128xf32> -> vector<32x128xf32>
    %c0_82 = arith.constant 0 : index
    %c0_83 = arith.constant 0 : index
    %161 = vector.load %arg9[%c0_82, %c0_83] : memref<1x128xf32, #tpu.memory_space<vmem>>, vector<1x128xf32>
    %162 = vector.broadcast %161 : vector<1x128xf32> to vector<32x128xf32>
    %163 = arith.addf %160, %162 : vector<32x128xf32>
    %164 = arith.addf %163, %54 : vector<32x128xf32>
    %cst_84 = arith.constant 0.000000e+00 : f32
    %165 = vector.broadcast %cst_84 : f32 to vector<32x128xf32>
    %166 = arith.maximumf %164, %165 : vector<32x128xf32>
    %c0_85 = arith.constant 0 : index
    %c0_86 = arith.constant 0 : index
    %167 = vector.load %arg10[%c0_85, %c0_86] : memref<32x128xf32, #tpu.memory_space<vmem>>, vector<32x128xf32>
    tpu.vector_store %arg10[%c0_85, %c0_86], %166 {strides = array<i32>} : memref<32x128xf32, #tpu.memory_space<vmem>>, vector<32x128xf32>,
    return
  }
  func.func @transform_0(%arg0: i32) -> (i32, i32) {
    %c0_i32 = arith.constant 0 : i32
    %c0_i32_0 = arith.constant 0 : i32
    return %arg0, %c0_i32 : i32, i32
  }
  func.func @transform_1(%arg0: i32) -> (i32, i32) {
    %c0_i32 = arith.constant 0 : i32
    %c0_i32_0 = arith.constant 0 : i32
    %c0_i32_1 = arith.constant 0 : i32
    return %c0_i32, %c0_i32_0 : i32, i32
  }
  func.func @transform_2(%arg0: i32) -> (i32, i32) {
    %c0_i32 = arith.constant 0 : i32
    %c0_i32_0 = arith.constant 0 : i32
    %c0_i32_1 = arith.constant 0 : i32
    return %c0_i32, %c0_i32_0 : i32, i32
  }
  func.func @transform_3(%arg0: i32) -> (i32, i32) {
    %c0_i32 = arith.constant 0 : i32
    %c0_i32_0 = arith.constant 0 : i32
    %c0_i32_1 = arith.constant 0 : i32
    return %c0_i32, %c0_i32_0 : i32, i32
  }
  func.func @transform_4(%arg0: i32) -> (i32, i32) {
    %c0_i32 = arith.constant 0 : i32
    %c0_i32_0 = arith.constant 0 : i32
    %c0_i32_1 = arith.constant 0 : i32
    return %c0_i32, %c0_i32_0 : i32, i32
  }
  func.func @transform_5(%arg0: i32) -> (i32, i32) {
    %c0_i32 = arith.constant 0 : i32
    %c0_i32_0 = arith.constant 0 : i32
    %c0_i32_1 = arith.constant 0 : i32
    return %c0_i32, %c0_i32_0 : i32, i32
  }
  func.func @transform_6(%arg0: i32) -> (i32, i32) {
    %c0_i32 = arith.constant 0 : i32
    %c0_i32_0 = arith.constant 0 : i32
    %c0_i32_1 = arith.constant 0 : i32
    return %c0_i32, %c0_i32_0 : i32, i32
  }
  func.func @transform_7(%arg0: i32) -> (i32, i32) {
    %c0_i32 = arith.constant 0 : i32
    %c0_i32_0 = arith.constant 0 : i32
    %c0_i32_1 = arith.constant 0 : i32
    return %c0_i32, %c0_i32_0 : i32, i32
  }
  func.func @transform_8(%arg0: i32) -> (i32, i32) {
    %c0_i32 = arith.constant 0 : i32
    %c0_i32_0 = arith.constant 0 : i32
    %c0_i32_1 = arith.constant 0 : i32
    return %c0_i32, %c0_i32_0 : i32, i32
  }
  func.func @transform_9(%arg0: i32) -> (i32, i32) {
    %c0_i32 = arith.constant 0 : i32
    %c0_i32_0 = arith.constant 0 : i32
    return %arg0, %c0_i32 : i32, i32
  }
}

</mosaic_0001>

<bundles_post_ra>
// kernel: tpu_custom_call.1
= control target key start
LH: loop header
LB: loop body
LE: loop exit
PB: predicated region body
PF: predicated region fallthrough
CT: control target
= control target key end

     0   :  { %14 = vsyncpa [#allocation3], 0  ;;  %s3150_s0 = inlined_call_operand.hbm [shape: f32[32,64], index: 0, kind: input, shape index: {}]   ;;  %s3151_s1 = inlined_call_operand.hbm [shape: f32[64,384], index: 1, kind: input, shape index: {}]   ;;  %s3152_s2 = inlined_call_operand.vmem [shape: f32[1,128], index: 2, kind: input, shape index: {}]   ;;  %s3153_s3 = inlined_call_operand.hbm [shape: f32[128,128], index: 3, kind: input, shape index: {}]   ;;  %s3154_s4 = inlined_call_operand.vmem [shape: f32[1,128], index: 4, kind: input, shape index: {}]   ;;  %s3155_s5 = inlined_call_operand.hbm [shape: f32[128,896], index: 5, kind: input, shape index: {}]   ;;  %s3156_s6 = inlined_call_operand.vmem [shape: f32[1,128], index: 6, kind: input, shape index: {}]   ;;  %s3157_s7 = inlined_call_operand.hbm [shape: f32[128,128], index: 7, kind: input, shape index: {}]   ;;  %s3158_s8 = inlined_call_operand.vmem [shape: f32[1,128], index: 8, kind: input, shape index: {}]   ;;  %s3159_s9 = inlined_call_operand.hbm [shape: f32[32,128], index: 9, kind: output, shape index: {}]  }
   0x1   :  { %15 = vsyncpa [#allocation6], 0 }
   0x2   :  { %16 = vsyncpa [#allocation9], 0 }
   0x3   :  { %17 = vsyncpa [#allocation4], 0  ;;  %s2788_s30 = smov [#allocation5]   ;;  %s2648_s13 = scalar_lea.hbm %s3151_s1, 3072 }
   0x4   :  { %s35_s10 = sshll.u32 %s2788_s30, 4  ;;  %p2649_p0 = scmp.ne.s32.totalorder %s3151_s1, %s2648_s13  ;;  %s36_s10 = int_to_ptr.vmem [resolvable:$true] %s35_s10 }
   0x5   :  { %p2652_p1 = scmp.lt.u32.totalorder %s2648_s13, %s3151_s1 }
   0x7   :  { %p2654_p2 = pnand %p2652_p1, %p2649_p0 }
   0x9   :  { %2657 = shalt.err (!%p2654_p2)
}
   0xa   :  { %s2658_s18 = scalar_lea.vmem %s36_s10, 3072  ;;  %p2663_p4 = scmp.lt.s32.totalorder %s36_s10, %s36_s10 }
   0xb   :  { %p2659_p3 = scmp.ne.s32.totalorder %s36_s10, %s2658_s18  ;;  %p2664_p5 = scmp.lt.s32.totalorder %s2658_s18, %s2658_s18 }
   0xd   :  { %p2665_p6 = por %p2664_p5, %p2663_p4 }
   0xf   :  { %p2666_p7 = pnand %p2665_p6, %p2659_p3 }
  0x11   :  { %2669 = shalt.err (!%p2666_p7)
}
  0x12   :  { %s2789_s19 = smov 384   ;;  %s2790_s20 = smov 24  }
  0x13   :  { %41 = dma.hbm_to_vmem [thread:$0]  %s3151_s1, 3072, %s36_s10, [#allocation6], %s2789_s19, %s2789_s19, %s2790_s20  }
  0x14   :  { %s2791_s23 = smov [#allocation8]   ;;  %s2670_s27 = scalar_lea.hbm %s3155_s5, 14336 }
  0x15   :  { %s63_s24 = sshll.u32 %s2791_s23, 4  ;;  %p2671_p8 = scmp.ne.s32.totalorder %s3155_s5, %s2670_s27  ;;  %s64_s24 = int_to_ptr.vmem [resolvable:$true] %s63_s24 }
  0x16   :  { %p2674_p9 = scmp.lt.u32.totalorder %s2670_s27, %s3155_s5 }
  0x18   :  { %p2676_p10 = pnand %p2674_p9, %p2671_p8 }
  0x1a   :  { %2679 = shalt.err (!%p2676_p10)
}
  0x1b   :  { %s2680_s12 = scalar_lea.vmem %s64_s24, 14336  ;;  %p2685_p12 = scmp.lt.s32.totalorder %s64_s24, %s64_s24 }
  0x1c   :  { %p2681_p11 = scmp.ne.s32.totalorder %s64_s24, %s2680_s12  ;;  %p2686_p13 = scmp.lt.s32.totalorder %s2680_s12, %s2680_s12 }
  0x1e   :  { %p2687_p0 = por %p2686_p13, %p2685_p12 }
  0x20   :  { %p2688_p1 = pnand %p2687_p0, %p2681_p11 }
  0x22   :  { %2691 = shalt.err (!%p2688_p1)
}
  0x23   :  { %s2792_s1 = smov 896   ;;  %s2793_s10 = smov 56  }
  0x24   :  { %69 = dma.hbm_to_vmem [thread:$0]  %s3155_s5, 14336, %s64_s24, [#allocation9], %s2792_s1, %s2792_s1, %s2793_s10  }
  0x25   :  { %s2794_s15 = smov [#allocation2]   ;;  %s2692_s19 = scalar_lea.hbm %s3150_s0, 512 }
  0x26   :  { %s23_s16 = sshll.u32 %s2794_s15, 4  ;;  %p2693_p2 = scmp.ne.s32.totalorder %s3150_s0, %s2692_s19  ;;  %s24_s16 = int_to_ptr.vmem [resolvable:$true] %s23_s16 }
  0x27   :  { %p2696_p3 = scmp.lt.u32.totalorder %s2692_s19, %s3150_s0 }
  0x29   :  { %p2698_p4 = pnand %p2696_p3, %p2693_p2 }
  0x2b   :  { %2701 = shalt.err (!%p2698_p4)
}
  0x2c   :  { %s2702_s25 = scalar_lea.vmem %s24_s16, 512  ;;  %p2707_p6 = scmp.lt.s32.totalorder %s24_s16, %s24_s16 }
  0x2d   :  { %p2703_p5 = scmp.ne.s32.totalorder %s24_s16, %s2702_s25  ;;  %p2708_p7 = scmp.lt.s32.totalorder %s2702_s25, %s2702_s25 }
  0x2f   :  { %p2709_p8 = por %p2708_p7, %p2707_p6 }
  0x31   :  { %p2710_p9 = pnand %p2709_p8, %p2703_p5 }
  0x33   :  { %2713 = shalt.err (!%p2710_p9)
}
  0x34   :  { %s2795_s5 = smov 128   ;;  %s2796_s24 = smov 8  }
  0x35   :  { %29 = dma.hbm_to_vmem [thread:$0]  %s3150_s0, 512, %s24_s16, [#allocation3], %s2795_s5, %s2795_s5, %s2796_s24  }
  0x36   :  { %s2797_s28 = smov [#allocation7]   ;;  %s2798_s30 = smov [#allocation10]  }
  0x37   :  { %s49_s29 = sshll.u32 %s2797_s28, 4  ;;  %s77_s11 = sshll.u32 %s2798_s30, 4  ;;  %s50_s29 = int_to_ptr.vmem [resolvable:$true] %s49_s29  ;;  %s78_s11 = int_to_ptr.vmem [resolvable:$true] %s77_s11 }
  0x38   :  { %s2714_s10 = scalar_lea.hbm %s3153_s3, 2048 }
  0x39   :  { %p2715_p10 = scmp.ne.s32.totalorder %s3153_s3, %s2714_s10  ;;  %p2718_p11 = scmp.lt.u32.totalorder %s2714_s10, %s3153_s3 }
  0x3b   :  { %p2720_p12 = pnand %p2718_p11, %p2715_p10 }
  0x3d   :  { %2723 = shalt.err (!%p2720_p12)
}
  0x3e   :  { %s2724_s0 = scalar_lea.vmem %s50_s29, 2048  ;;  %p2729_p0 = scmp.lt.s32.totalorder %s50_s29, %s50_s29 }
  0x3f   :  { %p2725_p13 = scmp.ne.s32.totalorder %s50_s29, %s2724_s0  ;;  %p2730_p1 = scmp.lt.s32.totalorder %s2724_s0, %s2724_s0 }
  0x41   :  { %p2731_p2 = por %p2730_p1, %p2729_p0 }
  0x43   :  { %p2732_p3 = pnand %p2731_p2, %p2725_p13 }
  0x45   :  { %2735 = shalt.err (!%p2732_p3)
}
  0x46   :  { %55 = dma.hbm_to_vmem [thread:$0]  %s3153_s3, 2048, %s50_s29, [#allocation6], %s2795_s5, %s2795_s5, %s2796_s24  }
  0x47   :  { %s2736_s21 = scalar_lea.hbm %s3157_s7, 2048 }
  0x48   :  { %p2737_p4 = scmp.ne.s32.totalorder %s3157_s7, %s2736_s21  ;;  %p2740_p5 = scmp.lt.u32.totalorder %s2736_s21, %s3157_s7 }
  0x4a   :  { %p2742_p6 = pnand %p2740_p5, %p2737_p4 }
  0x4c   :  { %2745 = shalt.err (!%p2742_p6)
}
  0x4d   :  { %s2746_s27 = scalar_lea.vmem %s78_s11, 2048  ;;  %p2751_p8 = scmp.lt.s32.totalorder %s78_s11, %s78_s11 }
  0x4e   :  { %p2747_p7 = scmp.ne.s32.totalorder %s78_s11, %s2746_s27  ;;  %p2752_p9 = scmp.lt.s32.totalorder %s2746_s27, %s2746_s27 }
  0x50   :  { %p2753_p10 = por %p2752_p9, %p2751_p8 }
  0x52   :  { %p2754_p11 = pnand %p2753_p10, %p2747_p7 }
  0x54   :  { %2757 = shalt.err (!%p2754_p11)
}
  0x55   :  { %83 = dma.hbm_to_vmem [thread:$0]  %s3157_s7, 2048, %s78_s11, [#allocation9], %s2795_s5, %s2795_s5, %s2796_s24  }
  0x56   :  { %2780 = dma.done.wait [#allocation3], 512  }
  0x57   :  { %2781 = vsyncadd [#allocation3], 4294966784 }
  0x58   :  { %2782 = dma.done.wait [#allocation6], 5120  }
  0x59   :  { %2783 = vsyncadd [#allocation6], 4294962176 }
  0x5a   :  { %2784 = dma.done.wait [#allocation9], 16384  }
  0x5b   :  { %2785 = vsyncadd [#allocation9], 4294950912  ;;  %v166_v0 = vld [vmem:[#allocation5] sm:$0xff]  ;;  %v167_v1 = vld [vmem:[#allocation5 + $0x18] sm:$0xff]  ;;  %vm174_vm0 = vcmask 523264  }
  0x5c   :  { %v168_v2 = vld [vmem:[#allocation5 + $0x30] sm:$0xff]  ;;  %v2300_v3 = vpack.c.bf16 %v167_v1, %v166_v0  ;;  %v169_v4 = vld [vmem:[#allocation5 + $0x48] sm:$0xff]  ;;  %v159_v6 = vld [vmem:[#allocation5 + $0x20] sm:$0xff] }
  0x5d   :  { %v158_v5 = vld [vmem:[#allocation5 + $0x8] sm:$0xff]  ;;  %v2304_v7 = vpack.c.bf16 %v169_v4, %v168_v2  ;;  %v170_v9 = vld [vmem:[#allocation5 + $0x60] sm:$0xff]  ;;  %v171_v10 = vld [vmem:[#allocation5 + $0x78] sm:$0xff] }
  0x5e   :  { %v2316_v8 = vpack.c.bf16 %v159_v6, %v158_v5  ;;  %v160_v11 = vld [vmem:[#allocation5 + $0x38] sm:$0xff]  ;;  %2301 = vmatprep.subr.bf16.mxu0 %v2300_v3  ;;  %v161_v12 = vld [vmem:[#allocation5 + $0x50] sm:$0xff]  ;;  %v162_v14 = vld [vmem:[#allocation5 + $0x68] sm:$0xff]  ;;  %v2308_v17 = vpack.c.bf16 %v171_v10, %v170_v9 }
  0x5f   :  { %2303 = vmatpush3.bf16.msra.mxu0 %v2300_v3  ;;  %v2320_v13 = vpack.c.bf16 %v161_v12, %v160_v11  ;;  %v163_v15 = vld [vmem:[#allocation5 + $0x80] sm:$0xff]  ;;  %v172_v18 = vld [vmem:[#allocation5 + $0x90] sm:$0xff]  ;;  %v173_v19 = vld [vmem:[#allocation5 + $0xa8] sm:$0xff] }
  0x60   :  { %2317 = vmatprep.subr.bf16.mxu1 %v2316_v8  ;;  %v154_v16 = vld [vmem:[#allocation2] sm:$0xff]  ;;  %2305 = vmatprep.subr.bf16.mxu0 %v2304_v7  ;;  %v2324_v20 = vpack.c.bf16 %v163_v15, %v162_v14  ;;  %v164_v21 = vld [vmem:[#allocation5 + $0x98] sm:$0xff]  ;;  %v165_v22 = vld [vmem:[#allocation5 + $0xb0] sm:$0xff]  ;;  %v2312_v23 = vpack.c.bf16 %v173_v19, %v172_v18 }
  0x61   :  { %2319 = vmatpush3.bf16.msra.mxu1 %v2316_v8  ;;  %1908 = vmatprep.mubr.msk.f32.mxu0 %vm174_vm0, %v154_v16  ;;  %v2328_v24 = vpack.c.bf16 %v165_v22, %v164_v21  ;;  %v386_v25 = vld [vmem:[#allocation5 + $0x10] sm:$0xff]  ;;  %v387_v26 = vld [vmem:[#allocation5 + $0x28] sm:$0xff]  ;;  %v388_v28 = vld [vmem:[#allocation5 + $0x40] sm:$0xff] }
  0x62   :  { %2321 = vmatprep.subr.bf16.mxu1 %v2320_v13  ;;  %1930 = vmatprep.mubr.msk.f32.mxu1 %vm174_vm0, %v154_v16  ;;  %v2332_v27 = vpack.c.bf16 %v387_v26, %v386_v25  ;;  %v389_v29 = vld [vmem:[#allocation5 + $0x58] sm:$0xff]  ;;  %v155_v30 = vld [vmem:[#allocation2 + $0x8] sm:$0xff]  ;;  %v156_v31 = vld [vmem:[#allocation2 + $0x10] sm:$0xff] }
  0x63   :  { %2307 = vmatpush3.bf16.msra.mxu0 %v2304_v7  ;;  %v2336_v32 = vpack.c.bf16 %v389_v29, %v388_v28  ;;  %v390_v33 = vld [vmem:[#allocation5 + $0x70] sm:$0xff]  ;;  %v391_v34 = vld [vmem:[#allocation5 + $0x88] sm:$0xff]  ;;  %v157_v35 = vld [vmem:[#allocation2 + $0x18] sm:$0xff] }
  0x64   :  { %2309 = vmatprep.subr.bf16.mxu0 %v2308_v17  ;;  %v2340_v36 = vpack.c.bf16 %v391_v34, %v390_v33  ;;  %v392_v37 = vld [vmem:[#allocation5 + $0xa0] sm:$0xff]  ;;  %v393_v38 = vld [vmem:[#allocation5 + $0xb8] sm:$0xff]  ;;  %v528_v41 = vld [vmem:[#allocation7 + $0x8] sm:$0xff] }
  0x65   :  { %2323 = vmatpush3.bf16.msra.mxu1 %v2320_v13  ;;  %v2344_v39 = vpack.c.bf16 %v393_v38, %v392_v37  ;;  %v527_v40 = vld [vmem:[#allocation7] sm:$0xff]  ;;  %v529_v43 = vld [vmem:[#allocation7 + $0x10] sm:$0xff]  ;;  %v530_v44 = vld [vmem:[#allocation7 + $0x18] sm:$0xff] }
  0x66   :  { %2325 = vmatprep.subr.bf16.mxu1 %v2324_v20  ;;  %v2348_v42 = vpack.c.bf16 %v528_v41, %v527_v40  ;;  %v2352_v45 = vpack.c.bf16 %v530_v44, %v529_v43  ;;  %v531_v46 = vld [vmem:[#allocation7 + $0x20] sm:$0xff]  ;;  %v532_v47 = vld [vmem:[#allocation7 + $0x28] sm:$0xff]  ;;  %v533_v49 = vld [vmem:[#allocation7 + $0x30] sm:$0xff] }
  0x67   :  { %2311 = vmatpush3.bf16.msra.mxu0 %v2308_v17  ;;  %v2356_v48 = vpack.c.bf16 %v532_v47, %v531_v46  ;;  %v534_v50 = vld [vmem:[#allocation7 + $0x38] sm:$0xff]  ;;  %v535_v52 = vld [vmem:[#allocation7 + $0x40] sm:$0xff]  ;;  %v536_v53 = vld [vmem:[#allocation7 + $0x48] sm:$0xff] }
  0x68   :  { %2313 = vmatprep.subr.bf16.mxu0 %v2312_v23  ;;  %v2360_v51 = vpack.c.bf16 %v534_v50, %v533_v49  ;;  %v2364_v54 = vpack.c.bf16 %v536_v53, %v535_v52  ;;  %v537_v55 = vld [vmem:[#allocation7 + $0x50] sm:$0xff]  ;;  %v538_v56 = vld [vmem:[#allocation7 + $0x58] sm:$0xff]  ;;  %v539_v58 = vld [vmem:[#allocation7 + $0x60] sm:$0xff] }
  0x69   :  { %2327 = vmatpush3.bf16.msra.mxu1 %v2324_v20  ;;  %v2368_v57 = vpack.c.bf16 %v538_v56, %v537_v55  ;;  %v540_v59 = vld [vmem:[#allocation7 + $0x68] sm:$0xff]  ;;  %v541_v61 = vld [vmem:[#allocation7 + $0x70] sm:$0xff]  ;;  %v542_v62 = vld [vmem:[#allocation7 + $0x78] sm:$0xff] }
  0x6a   :  { %2329 = vmatprep.subr.bf16.mxu1 %v2328_v24  ;;  %v2372_v60 = vpack.c.bf16 %v540_v59, %v539_v58  ;;  %v2376_v63 = vpack.c.bf16 %v542_v62, %v541_v61  ;;  %v655_v0 = vld [vmem:[#allocation8] sm:$0xff]  ;;  %v656_v1 = vld [vmem:[#allocation8 + $0x38] sm:$0xff]  ;;  %v640_v4 = vld [vmem:[#allocation8 + $0x50] sm:$0xff] }
  0x6b   :  { %2315 = vmatpush3.bf16.msra.mxu0 %v2312_v23  ;;  %v639_v2 = vld [vmem:[#allocation8 + $0x18] sm:$0xff]  ;;  %v2380_v3 = vpack.c.bf16 %v656_v1, %v655_v0  ;;  %v657_v5 = vld [vmem:[#allocation8 + $0x70] sm:$0xff]  ;;  %v658_v6 = vld [vmem:[#allocation8 + $0xa8] sm:$0xff] }
  0x6c   :  { %2333 = vmatprep.subr.bf16.mxu0 %v2332_v27  ;;  %v2931_v7 = vpack.c.bf16 %v640_v4, %v639_v2  ;;  %v2384_v8 = vpack.c.bf16 %v658_v6, %v657_v5  ;;  %v659_v9 = vld [vmem:[#allocation8 + $0xe0] sm:$0xff]  ;;  %v660_v10 = vld [vmem:[#allocation8 + $0x118] sm:$0xff]  ;;  %v661_v12 = vld [vmem:[#allocation8 + $0x150] sm:$0xff] }
  0x6d   :  { %2331 = vmatpush3.bf16.msra.mxu1 %v2328_v24  ;;  %v2388_v11 = vpack.c.bf16 %v660_v10, %v659_v9  ;;  %v662_v13 = vld [vmem:[#allocation8 + $0x188] sm:$0xff]  ;;  %v663_v15 = vld [vmem:[#allocation8 + $0x1c0] sm:$0xff]  ;;  %v665_v18 = vld [vmem:[#allocation8 + $0x230] sm:$0xff]  ;;  %v101_v24 = vlaneseq }
  0x6e   :  { %1909 = vmatmul.mubr.msk.f32.vlgmr.msra.gmra.mrb[0].mxu0 %vm174_vm0, %v155_v30  ;;  %2349 = vmatprep.subr.bf16.mxu1 %v2348_v42  ;;  %v2392_v14 = vpack.c.bf16 %v662_v13, %v661_v12  ;;  %v666_v19 = vld [vmem:[#allocation8 + $0x268] sm:$0xff]  ;;  %v667_v21 = vld [vmem:[#allocation8 + $0x2a0] sm:$0xff]  ;;  %v668_v22 = vld [vmem:[#allocation8 + $0x2d8] sm:$0xff] }
  0x6f   :  { %2335 = vmatpush3.bf16.msra.mxu0 %v2332_v27  ;;  %1911 = vmatprep.mubr.msk.f32.mxu0 %vm174_vm0, %v156_v31  ;;  %v2400_v20 = vpack.c.bf16 %v666_v19, %v665_v18  ;;  %v2404_v23 = vpack.c.bf16 %v668_v22, %v667_v21  ;;  %v2934_v25 = vshrl.u32 %v101_v24, 7  ;;  %v1672_v1 = vld [vmem:[%s3152_s2] ss:$0 sm:$0xff]  ;;  %v641_v18 = vld [vmem:[#allocation8 + $0x88] sm:$0xff] }
  0x70   :  { %1931 = vmatmul.mubr.msk.f32.vlgmr.msra.gmra.mrb[0].mxu1 %vm174_vm0, %v155_v30  ;;  %2337 = vmatprep.subr.bf16.mxu0 %v2336_v32  ;;  %v642_v19 = vld [vmem:[#allocation8 + $0xc0] sm:$0xff] }
  0x71   :  { %1933 = vmatprep.mubr.msk.f32.mxu1 %vm174_vm0, %v156_v31  ;;  %2351 = vmatpush3.bf16.msra.mxu1 %v2348_v42  ;;  %v104_v26 = vadd.s32 16, %v2934_v25  ;;  %v2938_v27 = vand.u32 15, %v2934_v25  ;;  %vm276_vm1 = vcmp.lt.s32.totalorder %v2934_v25, 1  ;;  %v105_v52 = vadd.s32 24, %v2934_v25 }
  0x72   :  { %1912 = vmatmul.mubr.msk.f32.gmra.mrb[2].mxu0 %vm174_vm0, %v157_v35  ;;  %2353 = vmatprep.subr.bf16.mxu1 %v2352_v45  ;;  %vm483_vm4 = vcmp.lt.s32.totalorder %v2934_v25, 7  ;;  %vm760_vm7 = vcmp.lt.s32.totalorder %v2934_v25, 3  ;;  %vm975_vm10 = vcmp.lt.s32.totalorder %v2934_v25, 2  ;;  %vm1343_vm13 = vcmp.lt.s32.totalorder %v2934_v25, 6 }
  0x73   :  { %2339 = vmatpush3.bf16.msra.mxu0 %v2336_v32  ;;  %1952 = vmatprep.mubr.msk.f32.mxu0 %vm174_vm0, %v154_v16  ;;  %v664_v16 = vld [vmem:[#allocation8 + $0x1f8] sm:$0xff]  ;;  %v2940_v28 = vand.u32 15, %v104_v26  ;;  %v2944_v32 = vadd.s32 4294967295, %v2938_v27  ;;  %v2965_v55 = vand.u32 15, %v105_v52  ;;  %v871_v52 = vld [vmem:[#allocation8 + $0x40] sm:$0xff] }
  0x74   :  { %1934 = vmatmul.mubr.msk.f32.gmra.mrb[2].mxu1 %vm174_vm0, %v157_v35  ;;  %2341 = vmatprep.subr.bf16.mxu0 %v2340_v36  ;;  %v2396_v17 = vpack.c.bf16 %v664_v16, %v663_v15  ;;  %v643_v26 = vld [vmem:[#allocation8 + $0xf8] sm:$0xff] }
  0x75   :  { %2355 = vmatpush3.bf16.msra.mxu1 %v2352_v45  ;;  %vm285_vm2 = vcmp.ge.s32.totalorder %v2944_v32, 0 }
  0x76   :  { %2357 = vmatprep.subr.bf16.mxu1 %v2356_v48 }
  0x77   :  { %2343 = vmatpush3.bf16.msra.mxu0 %v2340_v36 }
  0x78   :  { %2345 = vmatprep.subr.bf16.mxu0 %v2344_v39 }
  0x79   :  { %2359 = vmatpush3.bf16.msra.mxu1 %v2356_v48 }
  0x7a   :  { %2361 = vmatprep.subr.bf16.mxu1 %v2360_v51 }
  0x7b   :  { %2347 = vmatpush3.bf16.msra.mxu0 %v2344_v39 }
  0x7c   :  { %2381 = vmatprep.subr.bf16.mxu0 %v2380_v3 }
  0x7d   :  { %2363 = vmatpush3.bf16.msra.mxu1 %v2360_v51 }
  0x7e   :  { %1953 = vmatmul.mubr.msk.f32.vlgmr.msra.gmra.mrb[4].mxu0 %vm174_vm0, %v155_v30  ;;  %2365 = vmatprep.subr.bf16.mxu1 %v2364_v54 }
  0x7f   :  { %1955 = vmatprep.mubr.msk.f32.mxu0 %vm174_vm0, %v156_v31  ;;  %2383 = vmatpush3.bf16.msra.mxu0 %v2380_v3 }
  0x80   :  { %2385 = vmatprep.subr.bf16.mxu0 %v2384_v8 }
  0x81   :  { %2367 = vmatpush3.bf16.msra.mxu1 %v2364_v54  ;;  %v103_v54 = vadd.s32 8, %v2934_v25 }
  0x82   :  { %1956 = vmatmul.mubr.msk.f32.gmra.mrb[6].mxu0 %vm174_vm0, %v157_v35  ;;  %2369 = vmatprep.subr.bf16.mxu1 %v2368_v57  ;;  %v2947_v35 = vadd.s32 4294967295, %v2940_v28  ;;  %vm1477_vm0 = vcmp.lt.s32.totalorder %v2934_v25, 5  ;;  %v1675_v25 = vld [vmem:[%s3158_s8] ss:$0 sm:$0xff]  ;;  %s2799_s8 = smov [#allocation11]  }
  0x83   :  { %2387 = vmatpush3.bf16.msra.mxu0 %v2384_v8  ;;  %v2967_v56 = vand.u32 15, %v103_v54  ;;  %s1646_s1 = sshll.u32 %s2799_s8, 4  ;;  %s1647_s1 = int_to_ptr.vmem [resolvable:$true] %s1646_s1 }
  0x84   :  { %2389 = vmatprep.subr.bf16.mxu0 %v2388_v11  ;;  %vm287_vm3 = vcmp.ge.s32.totalorder %v2947_v35, 0  ;;  %s2758_s10 = scalar_lea.vmem %s1647_s1, 512  ;;  %p2763_p13 = scmp.lt.s32.totalorder %s1647_s1, %s1647_s1 }
  0x85   :  { %2371 = vmatpush3.bf16.msra.mxu1 %v2368_v57  ;;  %v2974_v62 = vadd.s32 1, %v2967_v56  ;;  %p2759_p12 = scmp.ne.s32.totalorder %s1647_s1, %s2758_s10  ;;  %p2764_p0 = scmp.lt.s32.totalorder %s2758_s10, %s2758_s10 }
  0x86   :  { %2373 = vmatprep.subr.bf16.mxu1 %v2372_v60 }
  0x87   :  { %2391 = vmatpush3.bf16.msra.mxu0 %v2388_v11  ;;  %vm497_vm6 = vcmp.lt.s32.totalorder %v2974_v62, 16  ;;  %v1485_v62 = vadd.s32 3, %v2965_v55  ;;  %p2765_p1 = por %p2764_p0, %p2763_p13 }
  0x88   :  { %2393 = vmatprep.subr.bf16.mxu0 %v2392_v14 }
  0x89   :  { %2375 = vmatpush3.bf16.msra.mxu1 %v2372_v60  ;;  %v2971_v60 = vadd.s32 1, %v2965_v55  ;;  %p2766_p2 = pnand %p2765_p1, %p2759_p12 }
  0x8a   :  { %2377 = vmatprep.subr.bf16.mxu1 %v2376_v63 }
  0x8b   :  { %2395 = vmatpush3.bf16.msra.mxu0 %v2392_v14  ;;  %vm499_vm5 = vcmp.lt.s32.totalorder %v2971_v60, 16 }
  0x8c   :  { %2397 = vmatprep.subr.bf16.mxu0 %v2396_v17 }
  0x8d   :  { %2379 = vmatpush3.bf16.msra.mxu1 %v2376_v63 }
  0x8e   :  { %2413 = vmatprep.subr.bf16.mxu1 %v2931_v7 }
  0x8f   :  { %2399 = vmatpush3.bf16.msra.mxu0 %v2396_v17 }
  0x90   :  { %2401 = vmatprep.subr.bf16.mxu0 %v2400_v20 }
  0x93   :  { %2403 = vmatpush3.bf16.msra.mxu0 %v2400_v20 }
  0x94   :  { %2405 = vmatprep.subr.bf16.mxu0 %v2404_v23 }
  0x97   :  { %2407 = vmatpush3.bf16.msra.mxu0 %v2404_v23  ;;  %v2416_v23 = vpack.c.bf16 %v642_v19, %v641_v18  ;;  %v874_v18 = vld [vmem:[#allocation8 + $0xe8] sm:$0xff]  ;;  %v875_v19 = vld [vmem:[#allocation8 + $0x120] sm:$0xff] }
 0x141   :  { %v1910_v29 = vpop.f32.mrb[0].mxu0 }
 0x142   :  { %v273_v30 = vrot.slane %v1910_v29, 7  ;;  %v253_v31 = vpop.f32.mrb[1].mxu0  ;;  %v644_v29 = vld [vmem:[#allocation8 + $0x130] sm:$0xff] }
 0x143   :  { %v272_v33 = vrot.slane %v253_v31, 7  ;;  %v1932_v34 = vpop.f32.mrb[0].mxu1  ;;  %v2420_v31 = vpack.c.bf16 %v644_v29, %v643_v26  ;;  %v1009_v26 = vld [vmem:[#allocation8 + $0x128] sm:$0xff] }
 0x144   :  { %v367_v36 = vpop.f32.mrb[1].mxu1 }
 0x145   :  { %v1913_v37 = vpop.f32.mrb[2].mxu0  ;;  %v279_v38 = vsel %vm276_vm1, %v272_v33, %v273_v30 }
 0x146   :  { %v275_v39 = vrot.slane %v1913_v37, 7  ;;  %v373_v40 = vadd.f32 %v1932_v34, %v279_v38  ;;  %v263_v41 = vpop.f32.mrb[3].mxu0  ;;  %v646_v34 = vld [vmem:[#allocation8 + $0x1a0] sm:$0xff]  ;;  %v647_v37 = vld [vmem:[#allocation8 + $0x1d8] sm:$0xff]  ;;  %v648_v38 = vld [vmem:[#allocation8 + $0x210] sm:$0xff] }
 0x147   :  { %v274_v42 = vrot.slane %v263_v41, 7  ;;  %v1935_v43 = vpop.f32.mrb[2].mxu1  ;;  %v650_v41 = vld [vmem:[#allocation8 + $0x280] sm:$0xff] }
 0x148   :  { %v280_v44 = vsel %vm276_vm1, %v275_v39, %v272_v33  ;;  %v377_v45 = vpop.f32.mrb[3].mxu1  ;;  %v645_v33 = vld [vmem:[#allocation8 + $0x168] sm:$0xff] }
 0x149   :  { %v297_v46 = vsel %vm285_vm2, %v280_v44, 0.0  ;;  %v277_v47 = vsel %vm276_vm1, %v274_v42, %v275_v39  ;;  %v278_v48 = vsel %vm276_vm1, %v273_v30, %v274_v42  ;;  %v2428_v39 = vpack.c.bf16 %v648_v38, %v647_v37  ;;  %v651_v42 = vld [vmem:[#allocation8 + $0x2b8] sm:$0xff]  ;;  %v877_v37 = vld [vmem:[#allocation8 + $0x190] sm:$0xff]  ;;  %v1010_v38 = vld [vmem:[#allocation8 + $0x160] sm:$0xff] }
 0x14a   :  { %v368_v49 = vadd.f32 %v367_v36, %v297_v46  ;;  %v383_v50 = vadd.f32 %v1935_v43, %v277_v47  ;;  %v299_v51 = vsel %vm287_vm3, %v278_v48, 0.0  ;;  %v2424_v36 = vpack.c.bf16 %v646_v34, %v645_v33  ;;  %v652_v43 = vld [vmem:[#allocation8 + $0x2f0] sm:$0xff]  ;;  %v670_v46 = vld [vmem:[#allocation8 + $0x348] sm:$0xff]  ;;  %v876_v33 = vld [vmem:[#allocation8 + $0x158] sm:$0xff] }
 0x14b   :  { %v378_v53 = vadd.f32 %v377_v45, %v299_v51  ;;  %v2436_v44 = vpack.c.bf16 %v652_v43, %v651_v42  ;;  %v669_v45 = vld [vmem:[#allocation8 + $0x310] sm:$0xff]  ;;  %v653_v47 = vld [vmem:[#allocation8 + $0x328] sm:$0xff]  ;;  %v2452_v34 = vpack.c.bf16 %v875_v19, %v874_v18  ;;  %v879_v42 = vld [vmem:[#allocation8 + $0x200] sm:$0xff] }
 0x14c   :  { %v2408_v48 = vpack.c.bf16 %v670_v46, %v669_v45  ;;  %v870_v51 = vld [vmem:[#allocation8 + $0x8] sm:$0xff]  ;;  %v1012_v43 = vld [vmem:[#allocation8 + $0x1d0] sm:$0xff]  ;;  %v1240_v19 = vld [vmem:[#allocation8 + $0x98] sm:$0xff] }
 0x14d   :  { %v2444_v54 = vpack.c.bf16 %v871_v52, %v870_v51  ;;  %v1124_v18 = vld [vmem:[#allocation8 + $0xc8] sm:$0xff] }
 0x14e   :  { %2409 = vmatprep.subr.bf16.mxu0 %v2408_v48 }
 0x14f   :  { %2411 = vmatpush3.bf16.msra.mxu0 %v2408_v48  ;;  %v881_v48 = vld [vmem:[#allocation8 + $0x270] sm:$0xff] }
 0x150   :  { %2445 = vmatprep.subr.bf16.mxu0 %v2444_v54 }
 0x151   :  { %v1954_v57 = vpop.f32.mrb[4].mxu0 }
 0x152   :  { %v480_v58 = vrot.slane %v1954_v57, 1  ;;  %v460_v59 = vpop.f32.mrb[5].mxu0  ;;  %v1005_v57 = vld [vmem:[#allocation8 + $0x48] sm:$0xff] }
 0x153   :  { %v479_v61 = vrot.slane %v460_v59, 1  ;;  %v1673_v59 = vld [vmem:[%s3154_s4] ss:$0 sm:$0xff] }
 0x155   :  { %v486_v63 = vsel %vm483_vm4, %v479_v61, %v480_v58  ;;  %v1957_v0 = vpop.f32.mrb[6].mxu0 }
 0x156   :  { %v508_v2 = vadd.f32 %v486_v63, %v368_v49  ;;  %v482_v3 = vrot.slane %v1957_v0, 1  ;;  %v470_v4 = vpop.f32.mrb[7].mxu0  ;;  %v654_v49 = vld [vmem:[#allocation8 + $0x360] sm:$0xff] }
 0x157   :  { %v481_v5 = vrot.slane %v470_v4, 1  ;;  %v1006_v4 = vld [vmem:[#allocation8 + $0x80] sm:$0xff] }
 0x158   :  { %v487_v6 = vsel %vm483_vm4, %v482_v3, %v479_v61  ;;  %v2985_v8 = vadd.f32 %v1672_v1, %v508_v2 }
 0x159   :  { %v507_v9 = vsel %vm499_vm5, %v487_v6, 0.0  ;;  %v484_v10 = vsel %vm483_vm4, %v481_v5, %v482_v3  ;;  %v485_v11 = vsel %vm483_vm4, %v480_v58, %v481_v5  ;;  %v873_v3 = vld [vmem:[#allocation8 + $0xb0] sm:$0xff]  ;;  %v1007_v5 = vld [vmem:[#allocation8 + $0xb8] sm:$0xff] }
 0x15a   :  { %v505_v12 = vsel %vm497_vm6, %v485_v11, 0.0  ;;  %v510_v13 = vadd.f32 %v484_v10, %v378_v53  ;;  %v523_v14 = vmax.f32 %v2985_v8, 0.0  ;;  %v511_v15 = vadd.f32 %v507_v9, %v383_v50  ;;  %v1004_v53 = vld [vmem:[#allocation8 + $0x10] sm:$0xff] }
 0x15b   :  { %v509_v16 = vadd.f32 %v505_v12, %v373_v40  ;;  %v649_v40 = vld [vmem:[#allocation8 + $0x248] sm:$0xff]  ;;  %v2440_v50 = vpack.c.bf16 %v654_v49, %v653_v47  ;;  %v2476_v58 = vpack.c.bf16 %v1005_v57, %v1004_v53  ;;  %v880_v47 = vld [vmem:[#allocation8 + $0x238] sm:$0xff]  ;;  %v1014_v49 = vld [vmem:[#allocation8 + $0x240] sm:$0xff] }
 0x15c   :  { %1990 = vmatprep.mubr.f32.mxu1 %v523_v14  ;;  %v2998_v17 = vadd.f32 %v1672_v1, %v510_v13  ;;  %v3003_v22 = vadd.f32 %v1672_v1, %v511_v15  ;;  %v2480_v15 = vpack.c.bf16 %v1007_v5, %v1006_v4  ;;  %v2464_v51 = vpack.c.bf16 %v881_v48, %v880_v47  ;;  %v882_v53 = vld [vmem:[#allocation8 + $0x2a8] sm:$0xff]  ;;  %v1016_v57 = vld [vmem:[#allocation8 + $0x2b0] sm:$0xff]  ;;  %v1121_v5 = vld [vmem:[#allocation8 + $0x20] sm:$0xff] }
 0x15d   :  { %v3000_v20 = vadd.f32 %v1672_v1, %v509_v16  ;;  %v872_v1 = vld [vmem:[#allocation8 + $0x78] sm:$0xff]  ;;  %v1246_v48 = vld [vmem:[#allocation8 + $0x1e8] sm:$0xff] }
 0x15e   :  { %v525_v24 = vmax.f32 %v2998_v17, 0.0  ;;  %v526_v30 = vmax.f32 %v3003_v22, 0.0  ;;  %v2448_v13 = vpack.c.bf16 %v873_v3, %v872_v1  ;;  %v1018_v1 = vld [vmem:[#allocation8 + $0x320] sm:$0xff]  ;;  %v1130_v47 = vld [vmem:[#allocation8 + $0x218] sm:$0xff] }
 0x15f   :  { %v524_v21 = vmax.f32 %v3000_v20, 0.0 }
 0x161   :  { %1991 = vmatmul.mubr.f32.vlgmr.msra.gmra.mrb[4].mxu1 %v524_v21 }
 0x162   :  { %1993 = vmatprep.mubr.f32.mxu1 %v525_v24  ;;  %2415 = vmatpush3.bf16.msra.mxu1 %v2931_v7  ;;  %v2432_v7 = vpack.c.bf16 %v650_v41, %v649_v40  ;;  %v2456_v40 = vpack.c.bf16 %v877_v37, %v876_v33  ;;  %v1242_v37 = vld [vmem:[#allocation8 + $0x108] sm:$0xff] }
 0x163   :  { %2417 = vmatprep.subr.bf16.mxu1 %v2416_v23 }
 0x165   :  { %1994 = vmatmul.mubr.f32.gmra.mrb[6].mxu1 %v526_v30 }
 0x166   :  { %2419 = vmatpush3.bf16.msra.mxu1 %v2416_v23  ;;  %v1008_v23 = vld [vmem:[#allocation8 + $0xf0] sm:$0xff] }
 0x167   :  { %2421 = vmatprep.subr.bf16.mxu1 %v2420_v31 }
 0x16a   :  { %2423 = vmatpush3.bf16.msra.mxu1 %v2420_v31 }
 0x16b   :  { %2425 = vmatprep.subr.bf16.mxu1 %v2424_v36 }
 0x16e   :  { %2427 = vmatpush3.bf16.msra.mxu1 %v2424_v36  ;;  %v2484_v36 = vpack.c.bf16 %v1009_v26, %v1008_v23  ;;  %v1241_v23 = vld [vmem:[#allocation8 + $0xd0] sm:$0xff] }
 0x16f   :  { %2429 = vmatprep.subr.bf16.mxu1 %v2428_v39  ;;  %v2544_v33 = vpack.c.bf16 %v1241_v23, %v1240_v19  ;;  %v1374_v19 = vld [vmem:[#allocation8 + $0xa0] sm:$0xff]  ;;  %v1375_v23 = vld [vmem:[#allocation8 + $0xd8] sm:$0xff] }
 0x172   :  { %2431 = vmatpush3.bf16.msra.mxu1 %v2428_v39  ;;  %v1011_v39 = vld [vmem:[#allocation8 + $0x198] sm:$0xff] }
 0x173   :  { %2433 = vmatprep.subr.bf16.mxu1 %v2432_v7  ;;  %v2488_v41 = vpack.c.bf16 %v1011_v39, %v1010_v38  ;;  %v1243_v38 = vld [vmem:[#allocation8 + $0x140] sm:$0xff] }
 0x176   :  { %2435 = vmatpush3.bf16.msra.mxu1 %v2432_v7  ;;  %v878_v7 = vld [vmem:[#allocation8 + $0x1c8] sm:$0xff] }
 0x177   :  { %2437 = vmatprep.subr.bf16.mxu1 %v2436_v44  ;;  %v2460_v45 = vpack.c.bf16 %v879_v42, %v878_v7  ;;  %v1128_v7 = vld [vmem:[#allocation8 + $0x1a8] sm:$0xff]  ;;  %v1244_v42 = vld [vmem:[#allocation8 + $0x178] sm:$0xff] }
 0x17a   :  { %2439 = vmatpush3.bf16.msra.mxu1 %v2436_v44  ;;  %v1013_v44 = vld [vmem:[#allocation8 + $0x208] sm:$0xff] }
 0x17b   :  { %2441 = vmatprep.subr.bf16.mxu1 %v2440_v50  ;;  %v2492_v46 = vpack.c.bf16 %v1013_v44, %v1012_v43  ;;  %v1245_v43 = vld [vmem:[#allocation8 + $0x1b0] sm:$0xff] }
 0x17e   :  { %2443 = vmatpush3.bf16.msra.mxu1 %v2440_v50  ;;  %v1015_v50 = vld [vmem:[#allocation8 + $0x278] sm:$0xff] }
 0x17f   :  { %2477 = vmatprep.subr.bf16.mxu1 %v2476_v58  ;;  %v2496_v52 = vpack.c.bf16 %v1015_v50, %v1014_v49  ;;  %v1247_v49 = vld [vmem:[#allocation8 + $0x220] sm:$0xff] }
 0x234   :  { %v1992_v61 = vpop.f32.mrb[4].mxu1 }
 0x235   :  { %v622_v63 = vadd.f32 %v1992_v61, %v1673_v59  ;;  %v616_v0 = vpop.f32.mrb[5].mxu1 }
 0x236   :  { %v617_v2 = vadd.f32 %v1673_v59, %v616_v0  ;;  %v885_v0 = vld [vmem:[#allocation8 + $0x350] sm:$0xff] }
 0x237   :  { %v3019_v10 = vmax.f32 %v622_v63, 0.0  ;;  %v884_v63 = vld [vmem:[#allocation8 + $0x318] sm:$0xff] }
 0x238   :  { %v3017_v6 = vmax.f32 %v617_v2, 0.0  ;;  %v1995_v9 = vpop.f32.mrb[6].mxu1  ;;  %v1019_v2 = vld [vmem:[#allocation8 + $0x358] sm:$0xff]  ;;  %v2472_v3 = vpack.c.bf16 %v885_v0, %v884_v63  ;;  %v1250_v0 = vld [vmem:[#allocation8 + $0x2c8] sm:$0xff] }
 0x239   :  { %v632_v11 = vadd.f32 %v1995_v9, %v1673_v59  ;;  %v626_v12 = vpop.f32.mrb[7].mxu1  ;;  %v2504_v4 = vpack.c.bf16 %v1019_v2, %v1018_v1  ;;  %v1122_v9 = vld [vmem:[#allocation8 + $0x58] sm:$0xff]  ;;  %v1251_v1 = vld [vmem:[#allocation8 + $0x300] sm:$0xff] }
 0x23a   :  { %v627_v16 = vadd.f32 %v1673_v59, %v626_v12  ;;  %2028 = vmatprep.mubr.f32.mxu0 %v3017_v6  ;;  %2066 = vmatprep.mubr.f32.mxu1 %v3017_v6  ;;  %v1239_v12 = vld [vmem:[#allocation8 + $0x60] sm:$0xff]  ;;  %v1134_v63 = vld [vmem:[#allocation8 + $0x2f8] sm:$0xff] }
 0x23b   :  { %2029 = vmatmul.mubr.f32.vlgmr.msra.gmra.mrb[8].mxu0 %v3019_v10  ;;  %2067 = vmatmul.mubr.f32.vlgmr.msra.gmra.mrb[8].mxu1 %v3019_v10  ;;  %v3027_v31 = vmax.f32 %v632_v11, 0.0  ;;  %v1238_v11 = vld [vmem:[#allocation8 + $0x28] sm:$0xff] }
 0x23c   :  { %v3025_v29 = vmax.f32 %v627_v16, 0.0  ;;  %2447 = vmatpush3.bf16.msra.mxu0 %v2444_v54  ;;  %2479 = vmatpush3.bf16.msra.mxu1 %v2476_v58  ;;  %v883_v54 = vld [vmem:[#allocation8 + $0x2e0] sm:$0xff]  ;;  %v1017_v58 = vld [vmem:[#allocation8 + $0x2e8] sm:$0xff]  ;;  %v1123_v16 = vld [vmem:[#allocation8 + $0x90] sm:$0xff] }
 0x23d   :  { %2449 = vmatprep.subr.bf16.mxu0 %v2448_v13  ;;  %2481 = vmatprep.subr.bf16.mxu1 %v2480_v15  ;;  %v2468_v59 = vpack.c.bf16 %v883_v54, %v882_v53  ;;  %v2500_v61 = vpack.c.bf16 %v1017_v58, %v1016_v57  ;;  %v2512_v26 = vpack.c.bf16 %v1124_v18, %v1123_v16  ;;  %v1132_v53 = vld [vmem:[#allocation8 + $0x288] sm:$0xff]  ;;  %v1248_v54 = vld [vmem:[#allocation8 + $0x258] sm:$0xff]  ;;  %v1249_v57 = vld [vmem:[#allocation8 + $0x290] sm:$0xff] }
 0x23e   :  { %2031 = vmatprep.mubr.f32.mxu0 %v3025_v29  ;;  %2069 = vmatprep.mubr.f32.mxu1 %v3025_v29  ;;  %v1373_v16 = vld [vmem:[#allocation8 + $0x68] sm:$0xff] }
 0x23f   :  { %2032 = vmatmul.mubr.f32.gmra.mrb[10].mxu0 %v3027_v31  ;;  %2070 = vmatmul.mubr.f32.gmra.mrb[10].mxu1 %v3027_v31 }
 0x240   :  { %2451 = vmatpush3.bf16.msra.mxu0 %v2448_v13  ;;  %2483 = vmatpush3.bf16.msra.mxu1 %v2480_v15  ;;  %v2508_v13 = vpack.c.bf16 %v1122_v9, %v1121_v5  ;;  %v2540_v15 = vpack.c.bf16 %v1239_v12, %v1238_v11  ;;  %v1136_v5 = vld [vmem:[#allocation8 + $0x368] sm:$0xff]  ;;  %v1252_v9 = vld [vmem:[#allocation8 + $0x338] sm:$0xff]  ;;  %v1253_v11 = vld [vmem:[#allocation8 + $0x370] sm:$0xff] }
 0x241   :  { %2104 = vmatprep.mubr.f32.mxu0 %v3017_v6  ;;  %2142 = vmatprep.mubr.f32.mxu1 %v3017_v6 }
 0x242   :  { %2453 = vmatprep.subr.bf16.mxu0 %v2452_v34  ;;  %2485 = vmatprep.subr.bf16.mxu1 %v2484_v36 }
 0x244   :  { %2455 = vmatpush3.bf16.msra.mxu0 %v2452_v34  ;;  %2487 = vmatpush3.bf16.msra.mxu1 %v2484_v36  ;;  %v1125_v34 = vld [vmem:[#allocation8 + $0x100] sm:$0xff]  ;;  %v1126_v36 = vld [vmem:[#allocation8 + $0x138] sm:$0xff] }
 0x245   :  { %2457 = vmatprep.subr.bf16.mxu0 %v2456_v40  ;;  %2489 = vmatprep.subr.bf16.mxu1 %v2488_v41  ;;  %v2516_v39 = vpack.c.bf16 %v1126_v36, %v1125_v34  ;;  %v1377_v34 = vld [vmem:[#allocation8 + $0x148] sm:$0xff] }
 0x248   :  { %2459 = vmatpush3.bf16.msra.mxu0 %v2456_v40  ;;  %2491 = vmatpush3.bf16.msra.mxu1 %v2488_v41  ;;  %v2548_v40 = vpack.c.bf16 %v1243_v38, %v1242_v37  ;;  %v1127_v41 = vld [vmem:[#allocation8 + $0x170] sm:$0xff]  ;;  %v1378_v37 = vld [vmem:[#allocation8 + $0x180] sm:$0xff]  ;;  %v1379_v38 = vld [vmem:[#allocation8 + $0x1b8] sm:$0xff] }
 0x249   :  { %2461 = vmatprep.subr.bf16.mxu0 %v2460_v45  ;;  %2493 = vmatprep.subr.bf16.mxu1 %v2492_v46  ;;  %v2520_v44 = vpack.c.bf16 %v1128_v7, %v1127_v41  ;;  %v1381_v41 = vld [vmem:[#allocation8 + $0x228] sm:$0xff] }
 0x24c   :  { %2463 = vmatpush3.bf16.msra.mxu0 %v2460_v45  ;;  %2495 = vmatpush3.bf16.msra.mxu1 %v2492_v46  ;;  %v2552_v45 = vpack.c.bf16 %v1245_v43, %v1244_v42  ;;  %v1129_v46 = vld [vmem:[#allocation8 + $0x1e0] sm:$0xff]  ;;  %v1383_v43 = vld [vmem:[#allocation8 + $0x298] sm:$0xff] }
 0x24d   :  { %2465 = vmatprep.subr.bf16.mxu0 %v2464_v51  ;;  %2497 = vmatprep.subr.bf16.mxu1 %v2496_v52  ;;  %v2524_v50 = vpack.c.bf16 %v1130_v47, %v1129_v46  ;;  %v1382_v42 = vld [vmem:[#allocation8 + $0x260] sm:$0xff]  ;;  %v1385_v46 = vld [vmem:[#allocation8 + $0x308] sm:$0xff] }
 0x250   :  { %2467 = vmatpush3.bf16.msra.mxu0 %v2464_v51  ;;  %2499 = vmatpush3.bf16.msra.mxu1 %v2496_v52  ;;  %v2556_v51 = vpack.c.bf16 %v1247_v49, %v1246_v48  ;;  %v1131_v52 = vld [vmem:[#allocation8 + $0x250] sm:$0xff]  ;;  %v1386_v48 = vld [vmem:[#allocation8 + $0x340] sm:$0xff] }
 0x251   :  { %2469 = vmatprep.subr.bf16.mxu0 %v2468_v59  ;;  %2501 = vmatprep.subr.bf16.mxu1 %v2500_v61  ;;  %v2528_v58 = vpack.c.bf16 %v1132_v53, %v1131_v52  ;;  %v1523_v52 = vld [vmem:[#allocation10 + $0x10] sm:$0xff] }
 0x254   :  { %2471 = vmatpush3.bf16.msra.mxu0 %v2468_v59  ;;  %2503 = vmatpush3.bf16.msra.mxu1 %v2500_v61  ;;  %v2560_v59 = vpack.c.bf16 %v1249_v57, %v1248_v54  ;;  %v1133_v61 = vld [vmem:[#allocation8 + $0x2c0] sm:$0xff]  ;;  %v1524_v54 = vld [vmem:[#allocation10 + $0x18] sm:$0xff] }
 0x255   :  { %2473 = vmatprep.subr.bf16.mxu0 %v2472_v3  ;;  %2505 = vmatprep.subr.bf16.mxu1 %v2504_v4  ;;  %v2532_v2 = vpack.c.bf16 %v1134_v63, %v1133_v61  ;;  %v2608_v57 = vpack.c.bf16 %v1524_v54, %v1523_v52  ;;  %v1527_v63 = vld [vmem:[#allocation10 + $0x30] sm:$0xff] }
 0x258   :  { %2475 = vmatpush3.bf16.msra.mxu0 %v2472_v3  ;;  %2507 = vmatpush3.bf16.msra.mxu1 %v2504_v4  ;;  %v2564_v3 = vpack.c.bf16 %v1251_v1, %v1250_v0  ;;  %v1135_v4 = vld [vmem:[#allocation8 + $0x330] sm:$0xff]  ;;  %v1528_v0 = vld [vmem:[#allocation10 + $0x38] sm:$0xff] }
 0x259   :  { %2509 = vmatprep.subr.bf16.mxu0 %v2508_v13  ;;  %2541 = vmatprep.subr.bf16.mxu1 %v2540_v15  ;;  %v2536_v12 = vpack.c.bf16 %v1136_v5, %v1135_v4  ;;  %v1533_v5 = vld [vmem:[#allocation10 + $0x60] sm:$0xff] }
 0x25b   :  { %2105 = vmatmul.mubr.f32.vlgmr.msra.gmra.mrb[12].mxu0 %v3019_v10  ;;  %2143 = vmatmul.mubr.f32.vlgmr.msra.gmra.mrb[12].mxu1 %v3019_v10 }
 0x25c   :  { %2107 = vmatprep.mubr.f32.mxu0 %v3025_v29  ;;  %2145 = vmatprep.mubr.f32.mxu1 %v3025_v29 }
 0x25d   :  { %2511 = vmatpush3.bf16.msra.mxu0 %v2508_v13  ;;  %2543 = vmatpush3.bf16.msra.mxu1 %v2540_v15  ;;  %v2568_v13 = vpack.c.bf16 %v1253_v11, %v1252_v9  ;;  %v1372_v15 = vld [vmem:[#allocation8 + $0x30] sm:$0xff]  ;;  %v1534_v9 = vld [vmem:[#allocation10 + $0x68] sm:$0xff] }
 0x25e   :  { %2513 = vmatprep.subr.bf16.mxu0 %v2512_v26  ;;  %2545 = vmatprep.subr.bf16.mxu1 %v2544_v33  ;;  %v2572_v18 = vpack.c.bf16 %v1373_v16, %v1372_v15  ;;  %v2628_v11 = vpack.c.bf16 %v1534_v9, %v1533_v5 }
 0x25f   :  { %2108 = vmatmul.mubr.f32.gmra.mrb[14].mxu0 %v3027_v31  ;;  %2146 = vmatmul.mubr.f32.gmra.mrb[14].mxu1 %v3027_v31 }
 0x260   :  { %2180 = vmatprep.mubr.f32.mxu0 %v3017_v6  ;;  %2218 = vmatprep.mubr.f32.mxu1 %v3017_v6 }
 0x261   :  { %2515 = vmatpush3.bf16.msra.mxu0 %v2512_v26  ;;  %2547 = vmatpush3.bf16.msra.mxu1 %v2544_v33  ;;  %v2576_v26 = vpack.c.bf16 %v1375_v23, %v1374_v19  ;;  %v1376_v33 = vld [vmem:[#allocation8 + $0x110] sm:$0xff] }
 0x262   :  { %2517 = vmatprep.subr.bf16.mxu0 %v2516_v39  ;;  %2549 = vmatprep.subr.bf16.mxu1 %v2548_v40  ;;  %v2580_v36 = vpack.c.bf16 %v1377_v34, %v1376_v33  ;;  %v765_v33 = vadd.s32 4294967293, %v2938_v27 }
 0x264   :  { %vm769_vm8 = vcmp.ge.s32.totalorder %v765_v33, 0 }
 0x265   :  { %2519 = vmatpush3.bf16.msra.mxu0 %v2516_v39  ;;  %2551 = vmatpush3.bf16.msra.mxu1 %v2548_v40  ;;  %v2584_v39 = vpack.c.bf16 %v1379_v38, %v1378_v37  ;;  %v1380_v40 = vld [vmem:[#allocation8 + $0x1f0] sm:$0xff] }
 0x266   :  { %2521 = vmatprep.subr.bf16.mxu0 %v2520_v44  ;;  %2553 = vmatprep.subr.bf16.mxu1 %v2552_v45  ;;  %v2588_v7 = vpack.c.bf16 %v1381_v41, %v1380_v40 }
 0x269   :  { %2523 = vmatpush3.bf16.msra.mxu0 %v2520_v44  ;;  %2555 = vmatpush3.bf16.msra.mxu1 %v2552_v45  ;;  %v2592_v44 = vpack.c.bf16 %v1383_v43, %v1382_v42  ;;  %v1384_v45 = vld [vmem:[#allocation8 + $0x2d0] sm:$0xff] }
 0x26a   :  { %2525 = vmatprep.subr.bf16.mxu0 %v2524_v50  ;;  %2557 = vmatprep.subr.bf16.mxu1 %v2556_v51  ;;  %v2596_v47 = vpack.c.bf16 %v1385_v46, %v1384_v45 }
 0x26d   :  { %2527 = vmatpush3.bf16.msra.mxu0 %v2524_v50  ;;  %2559 = vmatpush3.bf16.msra.mxu1 %v2556_v51  ;;  %v1521_v50 = vld [vmem:[#allocation10] sm:$0xff]  ;;  %v1522_v51 = vld [vmem:[#allocation10 + $0x8] sm:$0xff] }
 0x26e   :  { %2529 = vmatprep.subr.bf16.mxu0 %v2528_v58  ;;  %2561 = vmatprep.subr.bf16.mxu1 %v2560_v59  ;;  %v2604_v53 = vpack.c.bf16 %v1522_v51, %v1521_v50 }
 0x271   :  { %2531 = vmatpush3.bf16.msra.mxu0 %v2528_v58  ;;  %2563 = vmatpush3.bf16.msra.mxu1 %v2560_v59  ;;  %v1525_v58 = vld [vmem:[#allocation10 + $0x20] sm:$0xff]  ;;  %v1526_v59 = vld [vmem:[#allocation10 + $0x28] sm:$0xff] }
 0x272   :  { %2533 = vmatprep.subr.bf16.mxu0 %v2532_v2  ;;  %2565 = vmatprep.subr.bf16.mxu1 %v2564_v3  ;;  %v2612_v61 = vpack.c.bf16 %v1526_v59, %v1525_v58  ;;  %v980_v59 = vadd.s32 4294967294, %v2938_v27 }
 0x274   :  { %vm984_vm11 = vcmp.ge.s32.totalorder %v980_v59, 0 }
 0x275   :  { %2535 = vmatpush3.bf16.msra.mxu0 %v2532_v2  ;;  %2567 = vmatpush3.bf16.msra.mxu1 %v2564_v3  ;;  %v1531_v2 = vld [vmem:[#allocation10 + $0x50] sm:$0xff]  ;;  %v1532_v3 = vld [vmem:[#allocation10 + $0x58] sm:$0xff] }
 0x276   :  { %2537 = vmatprep.subr.bf16.mxu0 %v2536_v12  ;;  %2569 = vmatprep.subr.bf16.mxu1 %v2568_v13  ;;  %v2624_v4 = vpack.c.bf16 %v1532_v3, %v1531_v2 }
 0x279   :  { %2539 = vmatpush3.bf16.msra.mxu0 %v2536_v12  ;;  %2571 = vmatpush3.bf16.msra.mxu1 %v2568_v13  ;;  %v1535_v12 = vld [vmem:[#allocation10 + $0x70] sm:$0xff]  ;;  %v1536_v13 = vld [vmem:[#allocation10 + $0x78] sm:$0xff] }
 0x27a   :  { %2573 = vmatprep.subr.bf16.mxu0 %v2572_v18  ;;  %2605 = vmatprep.subr.bf16.mxu1 %v2604_v53  ;;  %v2632_v15 = vpack.c.bf16 %v1536_v13, %v1535_v12 }
 0x27c   :  { %2181 = vmatmul.mubr.f32.vlgmr.msra.gmra.mrb[16].mxu0 %v3019_v10  ;;  %2219 = vmatmul.mubr.f32.vlgmr.msra.gmra.mrb[16].mxu1 %v3019_v10 }
 0x27d   :  { %2183 = vmatprep.mubr.f32.mxu0 %v3025_v29  ;;  %2221 = vmatprep.mubr.f32.mxu1 %v3025_v29 }
 0x27e   :  { %2575 = vmatpush3.bf16.msra.mxu0 %v2572_v18  ;;  %2607 = vmatpush3.bf16.msra.mxu1 %v2604_v53 }
 0x27f   :  { %2577 = vmatprep.subr.bf16.mxu0 %v2576_v26  ;;  %2609 = vmatprep.subr.bf16.mxu1 %v2608_v57 }
 0x280   :  { %2184 = vmatmul.mubr.f32.gmra.mrb[18].mxu0 %v3027_v31  ;;  %2222 = vmatmul.mubr.f32.gmra.mrb[18].mxu1 %v3027_v31 }
 0x281   :  { %2256 = vmatprep.mubr.f32.mxu0 %v3017_v6  ;;  %v1387_v6 = vld [vmem:[#allocation8 + $0x378] sm:$0xff] }
 0x282   :  { %2579 = vmatpush3.bf16.msra.mxu0 %v2576_v26  ;;  %v2600_v49 = vpack.c.bf16 %v1387_v6, %v1386_v48  ;;  %2611 = vmatpush3.bf16.msra.mxu1 %v2608_v57 }
 0x283   :  { %2581 = vmatprep.subr.bf16.mxu0 %v2580_v36  ;;  %2613 = vmatprep.subr.bf16.mxu1 %v2612_v61 }
 0x286   :  { %2583 = vmatpush3.bf16.msra.mxu0 %v2580_v36  ;;  %2615 = vmatpush3.bf16.msra.mxu1 %v2612_v61  ;;  %v767_v36 = vadd.s32 4294967293, %v2940_v28 }
 0x287   :  { %2585 = vmatprep.subr.bf16.mxu0 %v2584_v39 }
 0x288   :  { %vm771_vm9 = vcmp.ge.s32.totalorder %v767_v36, 0 }
 0x28a   :  { %2587 = vmatpush3.bf16.msra.mxu0 %v2584_v39 }
 0x28b   :  { %2589 = vmatprep.subr.bf16.mxu0 %v2588_v7 }
 0x28e   :  { %2591 = vmatpush3.bf16.msra.mxu0 %v2588_v7 }
 0x28f   :  { %2593 = vmatprep.subr.bf16.mxu0 %v2592_v44 }
 0x292   :  { %2595 = vmatpush3.bf16.msra.mxu0 %v2592_v44 }
 0x293   :  { %2597 = vmatprep.subr.bf16.mxu0 %v2596_v47 }
 0x296   :  { %2599 = vmatpush3.bf16.msra.mxu0 %v2596_v47 }
 0x297   :  { %2601 = vmatprep.subr.bf16.mxu0 %v2600_v49 }
 0x29a   :  { %2603 = vmatpush3.bf16.msra.mxu0 %v2600_v49 }
 0x29d   :  { %2257 = vmatmul.mubr.f32.vlgmr.msra.gmra.mrb[20].mxu0 %v3019_v10  ;;  %v2616_v10 = vpack.c.bf16 %v1528_v0, %v1527_v63  ;;  %v982_v0 = vadd.s32 4294967294, %v2940_v28 }
 0x29e   :  { %2259 = vmatprep.mubr.f32.mxu0 %v3025_v29  ;;  %v1529_v29 = vld [vmem:[#allocation10 + $0x40] sm:$0xff] }
 0x29f   :  { %2617 = vmatprep.subr.bf16.mxu1 %v2616_v10  ;;  %vm986_vm12 = vcmp.ge.s32.totalorder %v982_v0, 0 }
 0x2a0   :  { %2619 = vmatpush3.bf16.msra.mxu1 %v2616_v10 }
 0x2a1   :  { %2260 = vmatmul.mubr.f32.gmra.mrb[22].mxu0 %v3027_v31  ;;  %v1530_v31 = vld [vmem:[#allocation10 + $0x48] sm:$0xff] }
 0x2a2   :  { %v2620_v1 = vpack.c.bf16 %v1530_v31, %v1529_v29 }
 0x2a4   :  { %2621 = vmatprep.subr.bf16.mxu1 %v2620_v1 }
 0x2a5   :  { %2623 = vmatpush3.bf16.msra.mxu1 %v2620_v1 }
 0x2a6   :  { %2625 = vmatprep.subr.bf16.mxu1 %v2624_v4 }
 0x2a9   :  { %2627 = vmatpush3.bf16.msra.mxu1 %v2624_v4 }
 0x2aa   :  { %2629 = vmatprep.subr.bf16.mxu1 %v2628_v11 }
 0x2ad   :  { %2631 = vmatpush3.bf16.msra.mxu1 %v2628_v11 }
 0x2ae   :  { %2633 = vmatprep.subr.bf16.mxu1 %v2632_v15 }
 0x2b1   :  { %2635 = vmatpush3.bf16.msra.mxu1 %v2632_v15 }
 0x30e   :  { %v2030_v16 = vpop.f32.mrb[8].mxu0  ;;  %v2068_v18 = vpop.f32.mrb[8].mxu1 }
 0x30f   :  { %v757_v19 = vrot.slane %v2030_v16, 5  ;;  %v737_v23 = vpop.f32.mrb[9].mxu0  ;;  %v851_v26 = vpop.f32.mrb[9].mxu1 }
 0x310   :  { %v756_v34 = vrot.slane %v737_v23, 5 }
 0x312   :  { %v763_v37 = vsel %vm760_vm7, %v756_v34, %v757_v19  ;;  %v2033_v38 = vpop.f32.mrb[10].mxu0  ;;  %v2071_v39 = vpop.f32.mrb[10].mxu1 }
 0x313   :  { %v857_v40 = vadd.f32 %v2068_v18, %v763_v37  ;;  %v759_v41 = vrot.slane %v2033_v38, 5  ;;  %v747_v7 = vpop.f32.mrb[11].mxu0  ;;  %v861_v42 = vpop.f32.mrb[11].mxu1 }
 0x314   :  { %v758_v43 = vrot.slane %v747_v7, 5 }
 0x315   :  { %v764_v44 = vsel %vm760_vm7, %v759_v41, %v756_v34 }
 0x316   :  { %v781_v45 = vsel %vm769_vm8, %v764_v44, 0.0  ;;  %v761_v46 = vsel %vm760_vm7, %v758_v43, %v759_v41  ;;  %v762_v47 = vsel %vm760_vm7, %v757_v19, %v758_v43 }
 0x317   :  { %v852_v48 = vadd.f32 %v851_v26, %v781_v45  ;;  %v867_v6 = vadd.f32 %v2071_v39, %v761_v46  ;;  %v783_v49 = vsel %vm771_vm9, %v762_v47, 0.0 }
 0x318   :  { %v862_v50 = vadd.f32 %v861_v42, %v783_v49 }
 0x32e   :  { %v2106_v51 = vpop.f32.mrb[12].mxu0  ;;  %v2144_v52 = vpop.f32.mrb[12].mxu1 }
 0x32f   :  { %v972_v53 = vrot.slane %v2106_v51, 6  ;;  %v1106_v54 = vrot.slane %v2144_v52, 7  ;;  %v952_v57 = vpop.f32.mrb[13].mxu0  ;;  %v1086_v58 = vpop.f32.mrb[13].mxu1  ;;  %v1349_v51 = vadd.s32 2, %v2967_v56 }
 0x330   :  { %v971_v61 = vrot.slane %v952_v57, 6  ;;  %v1105_v63 = vrot.slane %v1086_v58, 7 }
 0x331   :  { %vm1357_vm15 = vcmp.lt.s32.totalorder %v1349_v51, 16 }
 0x332   :  { %v978_v10 = vsel %vm975_vm10, %v971_v61, %v972_v53  ;;  %v1111_v29 = vsel %vm276_vm1, %v1105_v63, %v1106_v54  ;;  %v2109_v31 = vpop.f32.mrb[14].mxu0  ;;  %v2147_v1 = vpop.f32.mrb[14].mxu1 }
 0x333   :  { %v1001_v2 = vadd.f32 %v978_v10, %v857_v40  ;;  %v974_v3 = vrot.slane %v2109_v31, 6  ;;  %v1108_v4 = vrot.slane %v2147_v1, 7  ;;  %v962_v5 = vpop.f32.mrb[15].mxu0  ;;  %v1096_v9 = vpop.f32.mrb[15].mxu1 }
 0x334   :  { %v973_v11 = vrot.slane %v962_v5, 6  ;;  %v1107_v27 = vrot.slane %v1096_v9, 7 }
 0x335   :  { %v1118_v12 = vadd.f32 %v1111_v29, %v1001_v2  ;;  %v979_v28 = vsel %vm975_vm10, %v974_v3, %v971_v61  ;;  %v1112_v13 = vsel %vm276_vm1, %v1108_v4, %v1105_v63 }
 0x336   :  { %v996_v15 = vsel %vm984_vm11, %v979_v28, 0.0  ;;  %v976_v16 = vsel %vm975_vm10, %v973_v11, %v974_v3  ;;  %v977_v18 = vsel %vm975_vm10, %v972_v53, %v973_v11  ;;  %v1109_v33 = vsel %vm276_vm1, %v1107_v27, %v1108_v4 }
 0x337   :  { %v1000_v19 = vadd.f32 %v996_v15, %v852_v48  ;;  %v998_v23 = vsel %vm986_vm12, %v977_v18, 0.0  ;;  %v1003_v26 = vadd.f32 %v976_v16, %v867_v6  ;;  %v1113_v34 = vsel %vm285_vm2, %v1112_v13, 0.0 }
 0x338   :  { %v1002_v36 = vadd.f32 %v998_v23, %v862_v50  ;;  %v1110_v37 = vsel %vm276_vm1, %v1106_v54, %v1107_v27  ;;  %v1351_v48 = vadd.s32 2, %v2965_v55  ;;  %vm1493_vm1 = vcmp.lt.s32.totalorder %v1485_v62, 16 }
 0x339   :  { %v1117_v38 = vadd.f32 %v1113_v34, %v1000_v19  ;;  %v1115_v39 = vsel %vm287_vm3, %v1110_v37, 0.0  ;;  %v1120_v40 = vadd.f32 %v1109_v33, %v1003_v26  ;;  %v1483_v26 = vadd.s32 3, %v2967_v56  ;;  %v1674_v34 = vld [vmem:[%s3156_s6] ss:$0 sm:$0xff] }
 0x33a   :  { %v1119_v41 = vadd.f32 %v1115_v39, %v1002_v36  ;;  %vm1359_vm14 = vcmp.lt.s32.totalorder %v1351_v48, 16 }
 0x33b   :  { %vm1491_vm2 = vcmp.lt.s32.totalorder %v1483_v26, 16 }
 0x34f   :  { %v2182_v7 = vpop.f32.mrb[16].mxu0  ;;  %v2220_v42 = vpop.f32.mrb[16].mxu1 }
 0x350   :  { %v1223_v43 = vrot.slane %v2182_v7, 1  ;;  %v1340_v44 = vrot.slane %v2220_v42, 2  ;;  %v1203_v45 = vpop.f32.mrb[17].mxu0  ;;  %v1320_v46 = vpop.f32.mrb[17].mxu1 }
 0x351   :  { %v1222_v32 = vrot.slane %v1203_v45, 1  ;;  %v1339_v47 = vrot.slane %v1320_v46, 2 }
 0x353   :  { %v1228_v6 = vsel %vm483_vm4, %v1222_v32, %v1223_v43  ;;  %v1346_v35 = vsel %vm1343_vm13, %v1339_v47, %v1340_v44  ;;  %v2185_v49 = vpop.f32.mrb[18].mxu0  ;;  %v2223_v50 = vpop.f32.mrb[18].mxu1 }
 0x354   :  { %v1234_v52 = vadd.f32 %v1228_v6, %v1117_v38  ;;  %v1225_v53 = vrot.slane %v2185_v49, 1  ;;  %v1342_v54 = vrot.slane %v2223_v50, 2  ;;  %v1213_v57 = vpop.f32.mrb[19].mxu0  ;;  %v1330_v58 = vpop.f32.mrb[19].mxu1 }
 0x355   :  { %v1224_v59 = vrot.slane %v1213_v57, 1  ;;  %v1341_v61 = vrot.slane %v1330_v58, 2 }
 0x356   :  { %v1368_v63 = vadd.f32 %v1346_v35, %v1234_v52  ;;  %v1229_v0 = vsel %vm483_vm4, %v1225_v53, %v1222_v32  ;;  %v1347_v10 = vsel %vm1343_vm13, %v1342_v54, %v1339_v47 }
 0x357   :  { %v1233_v29 = vsel %vm499_vm5, %v1229_v0, 0.0  ;;  %v1226_v31 = vsel %vm483_vm4, %v1224_v59, %v1225_v53  ;;  %v1227_v1 = vsel %vm483_vm4, %v1223_v43, %v1224_v59  ;;  %v1344_v5 = vsel %vm1343_vm13, %v1341_v61, %v1342_v54 }
 0x358   :  { %v1237_v2 = vadd.f32 %v1233_v29, %v1120_v40  ;;  %v1231_v3 = vsel %vm497_vm6, %v1227_v1, 0.0  ;;  %v1236_v4 = vadd.f32 %v1226_v31, %v1119_v41  ;;  %v1367_v9 = vsel %vm1359_vm14, %v1347_v10, 0.0 }
 0x359   :  { %v1235_v11 = vadd.f32 %v1231_v3, %v1118_v12  ;;  %v1345_v60 = vsel %vm1343_vm13, %v1340_v44, %v1341_v61 }
 0x35a   :  { %v1371_v27 = vadd.f32 %v1367_v9, %v1237_v2  ;;  %v1365_v28 = vsel %vm1357_vm15, %v1345_v60, 0.0  ;;  %v1370_v13 = vadd.f32 %v1344_v5, %v1236_v4 }
 0x35b   :  { %v1369_v15 = vadd.f32 %v1365_v28, %v1235_v11 }
 0x370   :  { %v2258_v16 = vpop.f32.mrb[20].mxu0 }
 0x371   :  { %v1474_v18 = vrot.slane %v2258_v16, 3  ;;  %v1454_v19 = vpop.f32.mrb[21].mxu0 }
 0x372   :  { %v1473_v23 = vrot.slane %v1454_v19, 3 }
 0x374   :  { %v1480_v12 = vsel %vm1477_vm0, %v1473_v23, %v1474_v18  ;;  %v2261_v33 = vpop.f32.mrb[22].mxu0 }
 0x375   :  { %v1502_v36 = vadd.f32 %v1480_v12, %v1368_v63  ;;  %v1476_v37 = vrot.slane %v2261_v33, 3  ;;  %v1464_v38 = vpop.f32.mrb[23].mxu0 }
 0x376   :  { %v1475_v39 = vrot.slane %v1464_v38, 3 }
 0x377   :  { %v1481_v55 = vsel %vm1477_vm0, %v1476_v37, %v1473_v23  ;;  %v1513_v40 = vadd.f32 %v1674_v34, %v1502_v36 }
 0x378   :  { %v1501_v41 = vsel %vm1493_vm1, %v1481_v55, 0.0  ;;  %v1478_v56 = vsel %vm1477_vm0, %v1475_v39, %v1476_v37  ;;  %v1479_v7 = vsel %vm1477_vm0, %v1474_v18, %v1475_v39 }
 0x379   :  { %v1499_v42 = vsel %vm1491_vm2, %v1479_v7, 0.0  ;;  %v1504_v43 = vadd.f32 %v1478_v56, %v1370_v13  ;;  %v1517_v44 = vmax.f32 %v1513_v40, 0.0  ;;  %v1505_v45 = vadd.f32 %v1501_v41, %v1371_v27 }
 0x37a   :  { %v1503_v46 = vadd.f32 %v1499_v42, %v1369_v15 }
 0x37b   :  { %2294 = vmatprep.mubr.f32.mxu1 %v1517_v44  ;;  %v1515_v32 = vadd.f32 %v1674_v34, %v1504_v43  ;;  %v1516_v6 = vadd.f32 %v1674_v34, %v1505_v45 }
 0x37c   :  { %v1514_v47 = vadd.f32 %v1674_v34, %v1503_v46 }
 0x37d   :  { %v1519_v35 = vmax.f32 %v1515_v32, 0.0  ;;  %v1520_v49 = vmax.f32 %v1516_v6, 0.0 }
 0x37e   :  { %v1518_v48 = vmax.f32 %v1514_v47, 0.0 }
 0x380   :  { %2295 = vmatmul.mubr.f32.vlgmr.msra.gmra.mrb[20].mxu1 %v1518_v48 }
 0x381   :  { %2297 = vmatprep.mubr.f32.mxu1 %v1519_v35 }
 0x384   :  { %2298 = vmatmul.mubr.f32.gmra.mrb[22].mxu1 %v1520_v49 }
 0x453   :  { %v2296_v50 = vpop.f32.mrb[20].mxu1 }
 0x454   :  { %v1616_v51 = vadd.f32 %v2296_v50, %v1675_v25  ;;  %v1610_v52 = vpop.f32.mrb[21].mxu1 }
 0x455   :  { %v1611_v53 = vadd.f32 %v1675_v25, %v1610_v52 }
 0x456   :  { %v1630_v54 = vadd.f32 %v1616_v51, %v524_v21 }
 0x457   :  { %v1629_v57 = vadd.f32 %v1611_v53, %v523_v14  ;;  %v2299_v58 = vpop.f32.mrb[22].mxu1 }
 0x458   :  { %v1634_v59 = vmax.f32 %v1630_v54, 0.0  ;;  %v1626_v61 = vadd.f32 %v2299_v58, %v1675_v25  ;;  %v1620_v63 = vpop.f32.mrb[23].mxu1 }
 0x459   :  { %v1633_v0 = vmax.f32 %v1629_v57, 0.0  ;;  %v1621_v10 = vadd.f32 %v1675_v25, %v1620_v63 }
 0x45a   :  { %1638 = vst [vmem:[#allocation11 + $0x8] sm:$0xff] %v1634_v59  ;;  %v1632_v29 = vadd.f32 %v1626_v61, %v526_v30 }
 0x45b   :  { %1637 = vst [vmem:[#allocation11] sm:$0xff] %v1633_v0  ;;  %v1631_v20 = vadd.f32 %v1621_v10, %v525_v24 }
 0x45c   :  { %v1636_v21 = vmax.f32 %v1632_v29, 0.0 }
 0x45d   :  { %v1635_v31 = vmax.f32 %v1631_v20, 0.0 }
 0x45e   :  { %1640 = vst [vmem:[#allocation11 + $0x18] sm:$0xff] %v1636_v21 }
 0x45f   :  { %1639 = vst [vmem:[#allocation11 + $0x10] sm:$0xff] %v1635_v31 }
 0x460   :  { %2769 = shalt.err (!%p2766_p2)
}
 0x461   :  { %s2770_s15 = scalar_lea.hbm %s3159_s9, 512 }
 0x462   :  { %p2771_p3 = scmp.ne.s32.totalorder %s3159_s9, %s2770_s15  ;;  %p2774_p4 = scmp.lt.u32.totalorder %s2770_s15, %s3159_s9 }
 0x464   :  { %p2776_p5 = pnand %p2774_p4, %p2771_p3 }
 0x466   :  { %2779 = shalt.err (!%p2776_p5)
}
 0x467   :  { %1652 = dma.vmem_to_hbm [thread:$0]  %s1647_s1, 512, %s3159_s9, [#allocation4], %s2795_s5, %s2795_s5, %s2796_s24  }
 0x468   :  { %2786 = dma.done.wait [#allocation4], 512  }
 0x469   :  { %2787 = vsyncadd [#allocation4], 4294966784 }
 0x46a   :  { %1656 = vsyncpa [#allocation3], 1 }
 0x46b   :  { %1657 = vsyncpa [#allocation6], 1 }
 0x46c   :  { %1658 = vsyncpa [#allocation9], 1 }
 0x46d   :  { %1659 = vsyncpa [#allocation4], 1 }

</bundles_post_ra>
